<compile_context>
chip_gen: v6e
topology: v6e:2x2x1
jax: 0.10.0
libtpu: 0.0.40
codegen_flags: <defaults>
</compile_context>

<pallas_src>
import jax
import jax.numpy as jnp
from jax.experimental import pallas as pl
from jax.experimental.pallas import tpu as pltpu

EPS = 1e-5  # BatchNorm2d default eps


# ----------------------------- Pallas kernel ------------------------------ #
def up_fused_kernel(x2d_ref, x1d_ref, mhb_ref, rwp1_ref, p2_ref,
                    t1_ref, t2_ref, sel1_ref, sbc1_ref, sel2_ref, sbc2_ref,
                    g1_ref, be1_ref, g2_ref, be2_ref,
                    o_ref, xp_ref):
    """Fused: bilinear-up(x1) ++ x2 -> (conv3x3 -> BN -> ReLU) x 2, lane-dense."""
    Nb, Hp, Lmax = xp_ref.shape          # scratch: (N, H+2, max padded-row lanes)
    H = Hp - 2
    NH = Nb * H
    L1 = t1_ref.shape[1]                 # (W+2)*Cin   stage-1 input row lanes
    L1o = t1_ref.shape[2]                # (W+2)*Cmid  stage-1 output (padded layout)
    L2o = t2_ref.shape[2]                # W*Cout      stage-2 output (dense layout)
    W = L2o // g2_ref.shape[1]
    inv_count = 1.0 / float(NH * W)      # 1 / (N*H*W) pixels for BN batch stats
    f32 = jnp.float32

    # --- bilinear upsample (align_corners=True) of x1 + channel concat with x2,
    #     emitted directly into the zero-padded-row lane layout (pad lanes == 0).
    x1w = jnp.dot(x1d_ref[...], rwp1_ref[...], preferred_element_type=f32)   # (N*Hs, L1)
    x1u = jnp.dot(mhb_ref[...], x1w, preferred_element_type=f32)             # (NH,  L1)
    xin = x1u + jnp.dot(x2d_ref[...], p2_ref[...], preferred_element_type=f32)

    # Zero the scratch once: never-written border rows/lanes ARE the conv padding.
    xp_ref[...] = jnp.zeros((Nb, Hp, Lmax), f32)

    def conv_bn_relu(lp, t_ref, sel_ref, sbc_ref, g_ref, be_ref):
        out_lanes = t_ref.shape[2]
        # 3x3 conv == 3 row-Toeplitz matmuls (one per kernel row), lane-dense out.
        acc = jnp.zeros((NH, out_lanes), f32)
        for dy in range(3):
            lhs = xp_ref[:, dy:dy + H, :lp].reshape(NH, lp)
            acc = acc + jnp.dot(lhs, t_ref[dy], preferred_element_type=f32)
        # Conv bias omitted on purpose: batch-stat BatchNorm cancels it exactly.
        # BatchNorm2d (training-mode batch stats, biased var) + affine + ReLU.
        rsum = jnp.sum(acc, axis=0, keepdims=True)                            # (1, out_lanes)
        mean_c = jnp.dot(rsum, sel_ref[...], preferred_element_type=f32) * inv_count
        mean_l = jnp.dot(mean_c, sbc_ref[...], preferred_element_type=f32)
        d = acc - mean_l
        var_c = jnp.dot(jnp.sum(d * d, axis=0, keepdims=True), sel_ref[...],
                        preferred_element_type=f32) * inv_count
        scale_c = g_ref[...] * jax.lax.rsqrt(var_c + EPS)
        shift_c = be_ref[...] - mean_c * scale_c
        scale_l = jnp.dot(scale_c, sbc_ref[...], preferred_element_type=f32)
        shift_l = jnp.dot(shift_c, sbc_ref[...], preferred_element_type=f32)
        return jnp.maximum(acc * scale_l + shift_l, 0.0)

    # Stage 1: write concat input into the padded interior, conv + BN + ReLU.
    xp_ref[:, 1:H + 1, :L1] = xin.reshape(Nb, H, L1)
    y1 = conv_bn_relu(L1, t1_ref, sel1_ref, sbc1_ref, g1_ref, be1_ref)        # (NH, L1o)

    # Stage 2: y1 is already in the padded-row layout (pad lanes are zero).
    xp_ref[:, 1:H + 1, :L1o] = y1.reshape(Nb, H, L1o)
    o_ref[...] = conv_bn_relu(L1o, t2_ref, sel2_ref, sbc2_ref, g2_ref, be2_ref)


# ----------------------- constant-operand construction --------------------- #
def _interp_matrix(n_in, n_out):
    """Bilinear (align_corners=True) interpolation matrix, shape (n_out, n_in)."""
    if n_in == 1:
        return jnp.ones((n_out, 1), jnp.float32)
    src = jnp.arange(n_out, dtype=jnp.float32) * (n_in - 1) / (n_out - 1)
    lo = jnp.clip(jnp.floor(src).astype(jnp.int32), 0, n_in - 2)
    frac = src - lo.astype(jnp.float32)
    rows = jnp.arange(n_out)
    m = jnp.zeros((n_out, n_in), jnp.float32)
    m = m.at[rows, lo].add(1.0 - frac)
    m = m.at[rows, lo + 1].add(frac)
    return m


def _toeplitz_weights(w_hwio, W, padded_out):
    """(3,3,Cin,Cout) kernel -> (3, (W+2)*Cin, Lout) row-Toeplitz matmul operands."""
    _, _, Cin, Cout = w_hwio.shape
    Wp = W + 2
    wi = jnp.arange(Wp)[:, None]
    if padded_out:                                  # output stays in padded-row layout
        wo = jnp.arange(Wp)[None, :]
        A = jnp.stack([((wi == wo - 1 + dx) & (wo >= 1) & (wo <= W)).astype(jnp.float32)
                       for dx in range(3)], axis=0)            # (3, Wp, Wp)
    else:                                           # dense W*Cout output
        wo = jnp.arange(W)[None, :]
        A = jnp.stack([(wi == wo + dx).astype(jnp.float32)
                       for dx in range(3)], axis=0)            # (3, Wp, W)
    t = jnp.einsum('xio,yxcd->yicod', A, w_hwio)               # (3, Wp, Cin, Wo, Cout)
    return t.reshape(3, Wp * Cin, A.shape[2] * Cout)


def _placement(W, c_src, c_total, c_offset):
    """(W*c_src, (W+2)*c_total): scatter lane (w, c) -> padded lane (w+1, c_offset+c)."""
    Wp = W + 2
    shift = jnp.zeros((W, Wp), jnp.float32).at[jnp.arange(W), jnp.arange(W) + 1].set(1.0)
    place = jnp.zeros((c_src, c_total), jnp.float32).at[
        jnp.arange(c_src), c_offset + jnp.arange(c_src)].set(1.0)
    return jnp.einsum('wv,cd->wcvd', shift, place).reshape(W * c_src, Wp * c_total)


def _upsample_placement(Mw, c_src, c_total, c_offset):
    """(Ws*c_src, (W+2)*c_total): W-bilinear-upsample + scatter into padded concat row."""
    W, Ws = Mw.shape
    Wp = W + 2
    shift = jnp.zeros((W, Wp), jnp.float32).at[jnp.arange(W), jnp.arange(W) + 1].set(1.0)
    place = jnp.zeros((c_src, c_total), jnp.float32).at[
        jnp.arange(c_src), c_offset + jnp.arange(c_src)].set(1.0)
    return jnp.einsum('ow,ov,cd->wcvd', Mw, shift, place).reshape(Ws * c_src, Wp * c_total)


def _channel_select(W, C, padded):
    """Lane->channel reduction matrix (L, C) and channel->lane broadcast (C, L)."""
    if padded:
        interior = jnp.zeros((W + 2,), jnp.float32).at[1:W + 1].set(1.0)
    else:
        interior = jnp.ones((W,), jnp.float32)
    sel = jnp.einsum('w,cd->wcd', interior, jnp.eye(C, dtype=jnp.float32)).reshape(-1, C)
    return sel, sel.T


# --------------------------------- wrapper --------------------------------- #
@jax.jit
def up_forward(params, x1, x2=None):
    """Mirrors up.forward(x1, x2): NCHW in / NCHW out, one fused pallas_call."""
    # TODO(synk): bilinear=False branch (nn.ConvTranspose2d) not implemented here.
    N, C1, Hs, Ws = x1.shape
    H, W = 2 * Hs, 2 * Ws
    w1, w2 = params['w1'], params['w2']
    Cin, Cmid = w1.shape[2], w1.shape[3]
    Cout = w2.shape[3]
    Wp = W + 2

    # NHWC flattened to lane-dense (rows, cols*channels) slabs.
    x1d = jnp.transpose(x1, (0, 2, 3, 1)).reshape(N * Hs, Ws * C1)
    if x2 is not None:
        C2 = Cin - C1
        x2d = jnp.transpose(x2, (0, 2, 3, 1)).reshape(N * H, W * C2)
        p2 = _placement(W, C2, Cin, 0)                   # x2 channels go first
    else:
        C2 = 0                                           # no skip connection: x = x1_up
        x2d = jnp.zeros((N * H, W * C1), jnp.float32)    # zero contribution, same kernel
        p2 = jnp.zeros((W * C1, Wp * Cin), jnp.float32)

    Mw = _interp_matrix(Ws, W)                           # (W, Ws)
    Mh = _interp_matrix(Hs, H)                           # (H, Hs)
    mhb = jnp.kron(jnp.eye(N, dtype=jnp.float32), Mh)    # (N*H, N*Hs) block-diag
    rwp1 = _upsample_placement(Mw, C1, Cin, C2)          # (Ws*C1, Wp*Cin)

    t1 = _toeplitz_weights(w1, W, padded_out=True)       # (3, Wp*Cin,  Wp*Cmid)
    t2 = _toeplitz_weights(w2, W, padded_out=False)      # (3, Wp*Cmid, W*Cout)
    sel1, sbc1 = _channel_select(W, Cmid, padded=True)
    sel2, sbc2 = _channel_select(W, Cout, padded=False)

    g1 = params['g1'].reshape(1, Cmid)
    be1 = params['be1'].reshape(1, Cmid)
    g2 = params['g2'].reshape(1, Cout)
    be2 = params['be2'].reshape(1, Cout)

    Lmax = max(Wp * Cin, Wp * Cmid)
    out = pl.pallas_call(
        up_fused_kernel,
        out_shape=jax.ShapeDtypeStruct((N * H, W * Cout), jnp.float32),
        in_specs=[pl.BlockSpec(memory_space=pltpu.MemorySpace.VMEM)] * 15,
        out_specs=pl.BlockSpec(memory_space=pltpu.MemorySpace.VMEM),
        scratch_shapes=[pltpu.VMEM((N, H + 2, Lmax), jnp.float32)],
    )(x2d, x1d, mhb, rwp1, p2, t1, t2, sel1, sbc1, sel2, sbc2, g1, be1, g2, be2)

    return jnp.transpose(out.reshape(N, H, W, Cout), (0, 3, 1, 2))   # NHWC -> NCHW


# ----------------------------- reference (JAX) ----------------------------- #
def _ref_stage(x, w, b, g, be):
    y = jax.lax.conv_general_dilated(
        x, w, (1, 1), 'SAME', dimension_numbers=('NHWC', 'HWIO', 'NHWC')) + b
    mean = y.mean(axis=(0, 1, 2), keepdims=True)
    var = ((y - mean) ** 2).mean(axis=(0, 1, 2), keepdims=True)
    return jnp.maximum((y - mean) * jax.lax.rsqrt(var + EPS) * g + be, 0.0)


def _bilinear_up2_ref(x_nchw):
    N, C, H, W = x_nchw.shape
    Mh = _interp_matrix(H, 2 * H)
    Mw = _interp_matrix(W, 2 * W)
    return jnp.einsum('nchw,Hh,Ww->ncHW', x_nchw, Mh, Mw)


def ref_forward(params, x1, x2=None):
    x1u = _bilinear_up2_ref(x1)
    x = jnp.concatenate([x2, x1u], axis=1) if x2 is not None else x1u
    xh = jnp.transpose(x, (0, 2, 3, 1))
    y = _ref_stage(xh, params['w1'], params['b1'], params['g1'], params['be1'])
    y = _ref_stage(y, params['w2'], params['b2'], params['g2'], params['be2'])
    return jnp.transpose(y, (0, 3, 1, 2))


# ---------------------------------- main ----------------------------------- #
if __name__ == "__main__":
    key = jax.random.PRNGKey(0)
    in_ch, out_ch = 8, 8                       # up(in_ch=8, out_ch=8, bilinear=True)
    N, c_half, Hs, Ws = 2, in_ch // 2, 8, 16   # x1 is the low-res feature map

    k = jax.random.split(key, 12)
    x1 = jax.random.normal(k[0], (N, c_half, Hs, Hs), jnp.float32)       # (2,4,8,8)
    x2 = jax.random.normal(k[1], (N, c_half, Ws, Ws), jnp.float32)       # (2,4,16,16)

    # Deterministic synthetic parameters (shapes from double_conv(in_ch, out_ch)).
    params = {
        'w1':  0.1 * jax.random.normal(k[2], (3, 3, in_ch, out_ch), jnp.float32),
        'b1':  0.1 * jax.random.normal(k[3], (out_ch,), jnp.float32),   # ref only (BN cancels it)
        'g1':  1.0 + 0.1 * jax.random.normal(k[4], (out_ch,), jnp.float32),
        'be1': 0.1 * jax.random.normal(k[5], (out_ch,), jnp.float32),
        'w2':  0.1 * jax.random.normal(k[6], (3, 3, out_ch, out_ch), jnp.float32),
        'b2':  0.1 * jax.random.normal(k[7], (out_ch,), jnp.float32),   # ref only (BN cancels it)
        'g2':  1.0 + 0.1 * jax.random.normal(k[8], (out_ch,), jnp.float32),
        'be2': 0.1 * jax.random.normal(k[9], (out_ch,), jnp.float32),
    }

    out = jax.block_until_ready(up_forward(params, x1, x2))
    assert out.shape == (N, out_ch, Ws, Ws), out.shape

    ref = jax.block_until_ready(ref_forward(params, x1, x2))
    assert jnp.allclose(out, ref, atol=2e-3, rtol=2e-3), \
        float(jnp.max(jnp.abs(out - ref)))

    print("KERNEL_OK")
</pallas_src>

<mosaic_0001>
module attributes {stable_mosaic.version = 11 : i64} {
  func.func private @main(%arg0: i32) attributes {dimension_semantics = [#tpu.dimension_semantics<core_parallel>], iteration_bounds = array<i64: 2>, tpu.core_type = #tpu.core_type<sc_scalar_subcore>, window_params = []} {
    return
  }
}

module attributes {stable_mosaic.version = 11 : i64} {
  func.func private @main(%arg0: i32) attributes {dimension_semantics = [#tpu.dimension_semantics<core_parallel>], iteration_bounds = array<i64: 2>, tpu.core_type = #tpu.core_type<sc_scalar_subcore>, window_params = []} {
    return
  }
}

module attributes {stable_mosaic.version = 11 : i64} {
  func.func @up_fused_kernel(%arg0: memref<32x64xf32, #tpu.memory_space<vmem>>, %arg1: memref<16x32xf32, #tpu.memory_space<vmem>>, %arg2: memref<32x16xf32, #tpu.memory_space<vmem>>, %arg3: memref<32x144xf32, #tpu.memory_space<vmem>>, %arg4: memref<64x144xf32, #tpu.memory_space<vmem>>, %arg5: memref<3x144x144xf32, #tpu.memory_space<vmem>>, %arg6: memref<3x144x128xf32, #tpu.memory_space<vmem>>, %arg7: memref<144x8xf32, #tpu.memory_space<vmem>>, %arg8: memref<8x144xf32, #tpu.memory_space<vmem>>, %arg9: memref<128x8xf32, #tpu.memory_space<vmem>>, %arg10: memref<8x128xf32, #tpu.memory_space<vmem>>, %arg11: memref<1x8xf32, #tpu.memory_space<vmem>>, %arg12: memref<1x8xf32, #tpu.memory_space<vmem>>, %arg13: memref<1x8xf32, #tpu.memory_space<vmem>>, %arg14: memref<1x8xf32, #tpu.memory_space<vmem>>, %arg15: memref<32x128xf32, #tpu.memory_space<vmem>>, %arg16: memref<2x18x144xf32, #tpu.memory_space<vmem>>) attributes {dimension_semantics = [], scalar_prefetch = 0 : i64, scratch_operands = 1 : i64, tpu.core_type = #tpu.core_type<tc>} {
    %c0 = arith.constant 0 : index
    %c0_0 = arith.constant 0 : index
    %0 = vector.load %arg1[%c0, %c0_0] : memref<16x32xf32, #tpu.memory_space<vmem>>, vector<16x32xf32>
    %c0_1 = arith.constant 0 : index
    %c0_2 = arith.constant 0 : index
    %1 = vector.load %arg3[%c0_1, %c0_2] : memref<32x144xf32, #tpu.memory_space<vmem>>, vector<32x144xf32>
    %cst = arith.constant dense<0.000000e+00> : vector<16x144xf32>
    %2 = tpu.matmul %0, %1, %cst {dimension_numbers = #tpu.dot_dimension_numbers<[1], [0], [0], [1], [0, 0, 1, 1], [], []>} : vector<16x32xf32>, vector<32x144xf32>, vector<16x144xf32> -> vector<16x144xf32>
    %c0_3 = arith.constant 0 : index
    %c0_4 = arith.constant 0 : index
    %3 = vector.load %arg2[%c0_3, %c0_4] : memref<32x16xf32, #tpu.memory_space<vmem>>, vector<32x16xf32>
    %cst_5 = arith.constant dense<0.000000e+00> : vector<32x144xf32>
    %4 = tpu.matmul %3, %2, %cst_5 {dimension_numbers = #tpu.dot_dimension_numbers<[1], [0], [0], [1], [0, 0, 1, 1], [], []>} : vector<32x16xf32>, vector<16x144xf32>, vector<32x144xf32> -> vector<32x144xf32>
    %c0_6 = arith.constant 0 : index
    %c0_7 = arith.constant 0 : index
    %5 = vector.load %arg0[%c0_6, %c0_7] : memref<32x64xf32, #tpu.memory_space<vmem>>, vector<32x64xf32>
    %c0_8 = arith.constant 0 : index
    %c0_9 = arith.constant 0 : index
    %6 = vector.load %arg4[%c0_8, %c0_9] : memref<64x144xf32, #tpu.memory_space<vmem>>, vector<64x144xf32>
    %cst_10 = arith.constant dense<0.000000e+00> : vector<32x144xf32>
    %7 = tpu.matmul %5, %6, %cst_10 {dimension_numbers = #tpu.dot_dimension_numbers<[1], [0], [0], [1], [0, 0, 1, 1], [], []>} : vector<32x64xf32>, vector<64x144xf32>, vector<32x144xf32> -> vector<32x144xf32>
    %8 = arith.addf %4, %7 : vector<32x144xf32>
    %cst_11 = arith.constant 0.000000e+00 : f32
    %9 = vector.broadcast %cst_11 : f32 to vector<2x18x144xf32>
    %c0_12 = arith.constant 0 : index
    %c0_13 = arith.constant 0 : index
    %c0_14 = arith.constant 0 : index
    %10 = vector.load %arg16[%c0_12, %c0_13, %c0_14] : memref<2x18x144xf32, #tpu.memory_space<vmem>>, vector<2x18x144xf32>
    tpu.vector_store %arg16[%c0_12, %c0_13, %c0_14], %9 {strides = array<i32>} : memref<2x18x144xf32, #tpu.memory_space<vmem>>, vector<2x18x144xf32>,
    %11 = vector.shape_cast %8 : vector<32x144xf32> to vector<2x16x144xf32>
    %c0_15 = arith.constant 0 : index
    %c1 = arith.constant 1 : index
    %c0_16 = arith.constant 0 : index
    %12 = vector.load %arg16[%c0_15, %c1, %c0_16] : memref<2x18x144xf32, #tpu.memory_space<vmem>>, vector<2x16x144xf32>
    tpu.vector_store %arg16[%c0_15, %c1, %c0_16], %11 {strides = array<i32>} : memref<2x18x144xf32, #tpu.memory_space<vmem>>, vector<2x16x144xf32>,
    %cst_17 = arith.constant 0.000000e+00 : f32
    %13 = vector.broadcast %cst_17 : f32 to vector<32x144xf32>
    %c0_18 = arith.constant 0 : index
    %c0_19 = arith.constant 0 : index
    %c0_20 = arith.constant 0 : index
    %14 = vector.load %arg16[%c0_18, %c0_19, %c0_20] : memref<2x18x144xf32, #tpu.memory_space<vmem>>, vector<2x16x144xf32>
    %15 = vector.shape_cast %14 : vector<2x16x144xf32> to vector<32x144xf32>
    %c0_21 = arith.constant 0 : index
    %c0_22 = arith.constant 0 : index
    %c0_23 = arith.constant 0 : index
    %16 = vector.load %arg5[%c0_21, %c0_22, %c0_23] : memref<3x144x144xf32, #tpu.memory_space<vmem>>, vector<1x144x144xf32>
    %17 = vector.shape_cast %16 : vector<1x144x144xf32> to vector<144x144xf32>
    %cst_24 = arith.constant dense<0.000000e+00> : vector<32x144xf32>
    %18 = tpu.matmul %15, %17, %cst_24 {dimension_numbers = #tpu.dot_dimension_numbers<[1], [0], [0], [1], [0, 0, 1, 1], [], []>} : vector<32x144xf32>, vector<144x144xf32>, vector<32x144xf32> -> vector<32x144xf32>
    %19 = arith.addf %13, %18 : vector<32x144xf32>
    %c0_25 = arith.constant 0 : index
    %c1_26 = arith.constant 1 : index
    %c0_27 = arith.constant 0 : index
    %20 = vector.load %arg16[%c0_25, %c1_26, %c0_27] : memref<2x18x144xf32, #tpu.memory_space<vmem>>, vector<2x16x144xf32>
    %21 = vector.shape_cast %20 : vector<2x16x144xf32> to vector<32x144xf32>
    %c1_28 = arith.constant 1 : index
    %c0_29 = arith.constant 0 : index
    %c0_30 = arith.constant 0 : index
    %22 = vector.load %arg5[%c1_28, %c0_29, %c0_30] : memref<3x144x144xf32, #tpu.memory_space<vmem>>, vector<1x144x144xf32>
    %23 = vector.shape_cast %22 : vector<1x144x144xf32> to vector<144x144xf32>
    %cst_31 = arith.constant dense<0.000000e+00> : vector<32x144xf32>
    %24 = tpu.matmul %21, %23, %cst_31 {dimension_numbers = #tpu.dot_dimension_numbers<[1], [0], [0], [1], [0, 0, 1, 1], [], []>} : vector<32x144xf32>, vector<144x144xf32>, vector<32x144xf32> -> vector<32x144xf32>
    %25 = arith.addf %19, %24 : vector<32x144xf32>
    %c0_32 = arith.constant 0 : index
    %c2 = arith.constant 2 : index
    %c0_33 = arith.constant 0 : index
    %26 = vector.load %arg16[%c0_32, %c2, %c0_33] : memref<2x18x144xf32, #tpu.memory_space<vmem>>, vector<2x16x144xf32>
    %27 = vector.shape_cast %26 : vector<2x16x144xf32> to vector<32x144xf32>
    %c2_34 = arith.constant 2 : index
    %c0_35 = arith.constant 0 : index
    %c0_36 = arith.constant 0 : index
    %28 = vector.load %arg5[%c2_34, %c0_35, %c0_36] : memref<3x144x144xf32, #tpu.memory_space<vmem>>, vector<1x144x144xf32>
    %29 = vector.shape_cast %28 : vector<1x144x144xf32> to vector<144x144xf32>
    %cst_37 = arith.constant dense<0.000000e+00> : vector<32x144xf32>
    %30 = tpu.matmul %27, %29, %cst_37 {dimension_numbers = #tpu.dot_dimension_numbers<[1], [0], [0], [1], [0, 0, 1, 1], [], []>} : vector<32x144xf32>, vector<144x144xf32>, vector<32x144xf32> -> vector<32x144xf32>
    %31 = arith.addf %25, %30 : vector<32x144xf32>
    %cst_38 = arith.constant dense<0.000000e+00> : vector<144xf32>
    %32 = vector.multi_reduction <add>, %31, %cst_38 [0] : vector<32x144xf32> to vector<144xf32>
    %33 = vector.shape_cast %32 : vector<144xf32> to vector<1x144xf32>
    %c0_39 = arith.constant 0 : index
    %c0_40 = arith.constant 0 : index
    %34 = vector.load %arg7[%c0_39, %c0_40] : memref<144x8xf32, #tpu.memory_space<vmem>>, vector<144x8xf32>
    %cst_41 = arith.constant dense<0.000000e+00> : vector<1x8xf32>
    %35 = tpu.matmul %33, %34, %cst_41 {dimension_numbers = #tpu.dot_dimension_numbers<[1], [0], [0], [1], [0, 0, 1, 1], [], []>} : vector<1x144xf32>, vector<144x8xf32>, vector<1x8xf32> -> vector<1x8xf32>
    %cst_42 = arith.constant 0.001953125 : f32
    %36 = vector.broadcast %cst_42 : f32 to vector<1x8xf32>
    %37 = arith.mulf %35, %36 : vector<1x8xf32>
    %c0_43 = arith.constant 0 : index
    %c0_44 = arith.constant 0 : index
    %38 = vector.load %arg8[%c0_43, %c0_44] : memref<8x144xf32, #tpu.memory_space<vmem>>, vector<8x144xf32>
    %cst_45 = arith.constant dense<0.000000e+00> : vector<1x144xf32>
    %39 = tpu.matmul %37, %38, %cst_45 {dimension_numbers = #tpu.dot_dimension_numbers<[1], [0], [0], [1], [0, 0, 1, 1], [], []>} : vector<1x8xf32>, vector<8x144xf32>, vector<1x144xf32> -> vector<1x144xf32>
    %40 = vector.broadcast %39 : vector<1x144xf32> to vector<32x144xf32>
    %41 = arith.subf %31, %40 : vector<32x144xf32>
    %42 = arith.mulf %41, %41 : vector<32x144xf32>
    %cst_46 = arith.constant dense<0.000000e+00> : vector<144xf32>
    %43 = vector.multi_reduction <add>, %42, %cst_46 [0] : vector<32x144xf32> to vector<144xf32>
    %44 = vector.shape_cast %43 : vector<144xf32> to vector<1x144xf32>
    %c0_47 = arith.constant 0 : index
    %c0_48 = arith.constant 0 : index
    %45 = vector.load %arg7[%c0_47, %c0_48] : memref<144x8xf32, #tpu.memory_space<vmem>>, vector<144x8xf32>
    %cst_49 = arith.constant dense<0.000000e+00> : vector<1x8xf32>
    %46 = tpu.matmul %44, %45, %cst_49 {dimension_numbers = #tpu.dot_dimension_numbers<[1], [0], [0], [1], [0, 0, 1, 1], [], []>} : vector<1x144xf32>, vector<144x8xf32>, vector<1x8xf32> -> vector<1x8xf32>
    %cst_50 = arith.constant 0.001953125 : f32
    %47 = vector.broadcast %cst_50 : f32 to vector<1x8xf32>
    %48 = arith.mulf %46, %47 : vector<1x8xf32>
    %c0_51 = arith.constant 0 : index
    %c0_52 = arith.constant 0 : index
    %49 = vector.load %arg11[%c0_51, %c0_52] : memref<1x8xf32, #tpu.memory_space<vmem>>, vector<1x8xf32>
    %cst_53 = arith.constant 9.99999974E-6 : f32
    %50 = vector.broadcast %cst_53 : f32 to vector<1x8xf32>
    %51 = arith.addf %48, %50 : vector<1x8xf32>
    %52 = math.rsqrt %51 : vector<1x8xf32>
    %53 = arith.mulf %49, %52 : vector<1x8xf32>
    %c0_54 = arith.constant 0 : index
    %c0_55 = arith.constant 0 : index
    %54 = vector.load %arg12[%c0_54, %c0_55] : memref<1x8xf32, #tpu.memory_space<vmem>>, vector<1x8xf32>
    %55 = arith.mulf %37, %53 : vector<1x8xf32>
    %56 = arith.subf %54, %55 : vector<1x8xf32>
    %c0_56 = arith.constant 0 : index
    %c0_57 = arith.constant 0 : index
    %57 = vector.load %arg8[%c0_56, %c0_57] : memref<8x144xf32, #tpu.memory_space<vmem>>, vector<8x144xf32>
    %cst_58 = arith.constant dense<0.000000e+00> : vector<1x144xf32>
    %58 = tpu.matmul %53, %57, %cst_58 {dimension_numbers = #tpu.dot_dimension_numbers<[1], [0], [0], [1], [0, 0, 1, 1], [], []>} : vector<1x8xf32>, vector<8x144xf32>, vector<1x144xf32> -> vector<1x144xf32>
    %c0_59 = arith.constant 0 : index
    %c0_60 = arith.constant 0 : index
    %59 = vector.load %arg8[%c0_59, %c0_60] : memref<8x144xf32, #tpu.memory_space<vmem>>, vector<8x144xf32>
    %cst_61 = arith.constant dense<0.000000e+00> : vector<1x144xf32>
    %60 = tpu.matmul %56, %59, %cst_61 {dimension_numbers = #tpu.dot_dimension_numbers<[1], [0], [0], [1], [0, 0, 1, 1], [], []>} : vector<1x8xf32>, vector<8x144xf32>, vector<1x144xf32> -> vector<1x144xf32>
    %61 = vector.broadcast %58 : vector<1x144xf32> to vector<32x144xf32>
    %62 = arith.mulf %31, %61 : vector<32x144xf32>
    %63 = vector.broadcast %60 : vector<1x144xf32> to vector<32x144xf32>
    %64 = arith.addf %62, %63 : vector<32x144xf32>
    %cst_62 = arith.constant 0.000000e+00 : f32
    %65 = vector.broadcast %cst_62 : f32 to vector<32x144xf32>
    %66 = arith.maximumf %64, %65 : vector<32x144xf32>
    %67 = vector.shape_cast %66 : vector<32x144xf32> to vector<2x16x144xf32>
    %c0_63 = arith.constant 0 : index
    %c1_64 = arith.constant 1 : index
    %c0_65 = arith.constant 0 : index
    %68 = vector.load %arg16[%c0_63, %c1_64, %c0_65] : memref<2x18x144xf32, #tpu.memory_space<vmem>>, vector<2x16x144xf32>
    tpu.vector_store %arg16[%c0_63, %c1_64, %c0_65], %67 {strides = array<i32>} : memref<2x18x144xf32, #tpu.memory_space<vmem>>, vector<2x16x144xf32>,
    %cst_66 = arith.constant 0.000000e+00 : f32
    %69 = vector.broadcast %cst_66 : f32 to vector<32x128xf32>
    %c0_67 = arith.constant 0 : index
    %c0_68 = arith.constant 0 : index
    %c0_69 = arith.constant 0 : index
    %70 = vector.load %arg16[%c0_67, %c0_68, %c0_69] : memref<2x18x144xf32, #tpu.memory_space<vmem>>, vector<2x16x144xf32>
    %71 = vector.shape_cast %70 : vector<2x16x144xf32> to vector<32x144xf32>
    %c0_70 = arith.constant 0 : index
    %c0_71 = arith.constant 0 : index
    %c0_72 = arith.constant 0 : index
    %72 = vector.load %arg6[%c0_70, %c0_71, %c0_72] : memref<3x144x128xf32, #tpu.memory_space<vmem>>, vector<1x144x128xf32>
    %73 = vector.shape_cast %72 : vector<1x144x128xf32> to vector<144x128xf32>
    %cst_73 = arith.constant dense<0.000000e+00> : vector<32x128xf32>
    %74 = tpu.matmul %71, %73, %cst_73 {dimension_numbers = #tpu.dot_dimension_numbers<[1], [0], [0], [1], [0, 0, 1, 1], [], []>} : vector<32x144xf32>, vector<144x128xf32>, vector<32x128xf32> -> vector<32x128xf32>
    %75 = arith.addf %69, %74 : vector<32x128xf32>
    %c0_74 = arith.constant 0 : index
    %c1_75 = arith.constant 1 : index
    %c0_76 = arith.constant 0 : index
    %76 = vector.load %arg16[%c0_74, %c1_75, %c0_76] : memref<2x18x144xf32, #tpu.memory_space<vmem>>, vector<2x16x144xf32>
    %77 = vector.shape_cast %76 : vector<2x16x144xf32> to vector<32x144xf32>
    %c1_77 = arith.constant 1 : index
    %c0_78 = arith.constant 0 : index
    %c0_79 = arith.constant 0 : index
    %78 = vector.load %arg6[%c1_77, %c0_78, %c0_79] : memref<3x144x128xf32, #tpu.memory_space<vmem>>, vector<1x144x128xf32>
    %79 = vector.shape_cast %78 : vector<1x144x128xf32> to vector<144x128xf32>
    %cst_80 = arith.constant dense<0.000000e+00> : vector<32x128xf32>
    %80 = tpu.matmul %77, %79, %cst_80 {dimension_numbers = #tpu.dot_dimension_numbers<[1], [0], [0], [1], [0, 0, 1, 1], [], []>} : vector<32x144xf32>, vector<144x128xf32>, vector<32x128xf32> -> vector<32x128xf32>
    %81 = arith.addf %75, %80 : vector<32x128xf32>
    %c0_81 = arith.constant 0 : index
    %c2_82 = arith.constant 2 : index
    %c0_83 = arith.constant 0 : index
    %82 = vector.load %arg16[%c0_81, %c2_82, %c0_83] : memref<2x18x144xf32, #tpu.memory_space<vmem>>, vector<2x16x144xf32>
    %83 = vector.shape_cast %82 : vector<2x16x144xf32> to vector<32x144xf32>
    %c2_84 = arith.constant 2 : index
    %c0_85 = arith.constant 0 : index
    %c0_86 = arith.constant 0 : index
    %84 = vector.load %arg6[%c2_84, %c0_85, %c0_86] : memref<3x144x128xf32, #tpu.memory_space<vmem>>, vector<1x144x128xf32>
    %85 = vector.shape_cast %84 : vector<1x144x128xf32> to vector<144x128xf32>
    %cst_87 = arith.constant dense<0.000000e+00> : vector<32x128xf32>
    %86 = tpu.matmul %83, %85, %cst_87 {dimension_numbers = #tpu.dot_dimension_numbers<[1], [0], [0], [1], [0, 0, 1, 1], [], []>} : vector<32x144xf32>, vector<144x128xf32>, vector<32x128xf32> -> vector<32x128xf32>
    %87 = arith.addf %81, %86 : vector<32x128xf32>
    %cst_88 = arith.constant dense<0.000000e+00> : vector<128xf32>
    %88 = vector.multi_reduction <add>, %87, %cst_88 [0] : vector<32x128xf32> to vector<128xf32>
    %89 = vector.shape_cast %88 : vector<128xf32> to vector<1x128xf32>
    %c0_89 = arith.constant 0 : index
    %c0_90 = arith.constant 0 : index
    %90 = vector.load %arg9[%c0_89, %c0_90] : memref<128x8xf32, #tpu.memory_space<vmem>>, vector<128x8xf32>
    %cst_91 = arith.constant dense<0.000000e+00> : vector<1x8xf32>
    %91 = tpu.matmul %89, %90, %cst_91 {dimension_numbers = #tpu.dot_dimension_numbers<[1], [0], [0], [1], [0, 0, 1, 1], [], []>} : vector<1x128xf32>, vector<128x8xf32>, vector<1x8xf32> -> vector<1x8xf32>
    %cst_92 = arith.constant 0.001953125 : f32
    %92 = vector.broadcast %cst_92 : f32 to vector<1x8xf32>
    %93 = arith.mulf %91, %92 : vector<1x8xf32>
    %c0_93 = arith.constant 0 : index
    %c0_94 = arith.constant 0 : index
    %94 = vector.load %arg10[%c0_93, %c0_94] : memref<8x128xf32, #tpu.memory_space<vmem>>, vector<8x128xf32>
    %cst_95 = arith.constant dense<0.000000e+00> : vector<1x128xf32>
    %95 = tpu.matmul %93, %94, %cst_95 {dimension_numbers = #tpu.dot_dimension_numbers<[1], [0], [0], [1], [0, 0, 1, 1], [], []>} : vector<1x8xf32>, vector<8x128xf32>, vector<1x128xf32> -> vector<1x128xf32>
    %96 = vector.broadcast %95 : vector<1x128xf32> to vector<32x128xf32>
    %97 = arith.subf %87, %96 : vector<32x128xf32>
    %98 = arith.mulf %97, %97 : vector<32x128xf32>
    %cst_96 = arith.constant dense<0.000000e+00> : vector<128xf32>
    %99 = vector.multi_reduction <add>, %98, %cst_96 [0] : vector<32x128xf32> to vector<128xf32>
    %100 = vector.shape_cast %99 : vector<128xf32> to vector<1x128xf32>
    %c0_97 = arith.constant 0 : index
    %c0_98 = arith.constant 0 : index
    %101 = vector.load %arg9[%c0_97, %c0_98] : memref<128x8xf32, #tpu.memory_space<vmem>>, vector<128x8xf32>
    %cst_99 = arith.constant dense<0.000000e+00> : vector<1x8xf32>
    %102 = tpu.matmul %100, %101, %cst_99 {dimension_numbers = #tpu.dot_dimension_numbers<[1], [0], [0], [1], [0, 0, 1, 1], [], []>} : vector<1x128xf32>, vector<128x8xf32>, vector<1x8xf32> -> vector<1x8xf32>
    %cst_100 = arith.constant 0.001953125 : f32
    %103 = vector.broadcast %cst_100 : f32 to vector<1x8xf32>
    %104 = arith.mulf %102, %103 : vector<1x8xf32>
    %c0_101 = arith.constant 0 : index
    %c0_102 = arith.constant 0 : index
    %105 = vector.load %arg13[%c0_101, %c0_102] : memref<1x8xf32, #tpu.memory_space<vmem>>, vector<1x8xf32>
    %cst_103 = arith.constant 9.99999974E-6 : f32
    %106 = vector.broadcast %cst_103 : f32 to vector<1x8xf32>
    %107 = arith.addf %104, %106 : vector<1x8xf32>
    %108 = math.rsqrt %107 : vector<1x8xf32>
    %109 = arith.mulf %105, %108 : vector<1x8xf32>
    %c0_104 = arith.constant 0 : index
    %c0_105 = arith.constant 0 : index
    %110 = vector.load %arg14[%c0_104, %c0_105] : memref<1x8xf32, #tpu.memory_space<vmem>>, vector<1x8xf32>
    %111 = arith.mulf %93, %109 : vector<1x8xf32>
    %112 = arith.subf %110, %111 : vector<1x8xf32>
    %c0_106 = arith.constant 0 : index
    %c0_107 = arith.constant 0 : index
    %113 = vector.load %arg10[%c0_106, %c0_107] : memref<8x128xf32, #tpu.memory_space<vmem>>, vector<8x128xf32>
    %cst_108 = arith.constant dense<0.000000e+00> : vector<1x128xf32>
    %114 = tpu.matmul %109, %113, %cst_108 {dimension_numbers = #tpu.dot_dimension_numbers<[1], [0], [0], [1], [0, 0, 1, 1], [], []>} : vector<1x8xf32>, vector<8x128xf32>, vector<1x128xf32> -> vector<1x128xf32>
    %c0_109 = arith.constant 0 : index
    %c0_110 = arith.constant 0 : index
    %115 = vector.load %arg10[%c0_109, %c0_110] : memref<8x128xf32, #tpu.memory_space<vmem>>, vector<8x128xf32>
    %cst_111 = arith.constant dense<0.000000e+00> : vector<1x128xf32>
    %116 = tpu.matmul %112, %115, %cst_111 {dimension_numbers = #tpu.dot_dimension_numbers<[1], [0], [0], [1], [0, 0, 1, 1], [], []>} : vector<1x8xf32>, vector<8x128xf32>, vector<1x128xf32> -> vector<1x128xf32>
    %117 = vector.broadcast %114 : vector<1x128xf32> to vector<32x128xf32>
    %118 = arith.mulf %87, %117 : vector<32x128xf32>
    %119 = vector.broadcast %116 : vector<1x128xf32> to vector<32x128xf32>
    %120 = arith.addf %118, %119 : vector<32x128xf32>
    %cst_112 = arith.constant 0.000000e+00 : f32
    %121 = vector.broadcast %cst_112 : f32 to vector<32x128xf32>
    %122 = arith.maximumf %120, %121 : vector<32x128xf32>
    %c0_113 = arith.constant 0 : index
    %c0_114 = arith.constant 0 : index
    %123 = vector.load %arg15[%c0_113, %c0_114] : memref<32x128xf32, #tpu.memory_space<vmem>>, vector<32x128xf32>
    tpu.vector_store %arg15[%c0_113, %c0_114], %122 {strides = array<i32>} : memref<32x128xf32, #tpu.memory_space<vmem>>, vector<32x128xf32>,
    return
  }
}

</mosaic_0001>

<bundles_post_ra>
// kernel: up_forward.1
= control target key start
LH: loop header
LB: loop body
LE: loop exit
PB: predicated region body
PF: predicated region fallthrough
CT: control target
= control target key end

     0   :  { %v2644_v3 = vmov 0.0   ;;  %vm60_vm0 = vcmask 261120   ;;  %vm168_vm1 = vcmask 523264   ;;  %vm270_vm2 = vcmask 130048   ;;  %s3831_s3 = inlined_call_operand.vmem [shape: f32[32,144], index: 3, kind: input, shape index: {}]   ;;  %s3832_s4 = inlined_call_operand.vmem [shape: f32[64,144], index: 4, kind: input, shape index: {}]   ;;  %s3833_s1 = inlined_call_operand.vmem [shape: f32[16,32], index: 1, kind: input, shape index: {}]   ;;  %s3834_s0 = inlined_call_operand.vmem [shape: f32[32,64], index: 0, kind: input, shape index: {}]   ;;  %s3835_s5 = inlined_call_operand.vmem [shape: f32[3,144,144], index: 5, kind: input, shape index: {}]   ;;  %s3836_s2 = inlined_call_operand.vmem [shape: f32[32,16], index: 2, kind: input, shape index: {}]   ;;  %s3837_s7 = inlined_call_operand.vmem [shape: f32[144,8], index: 7, kind: input, shape index: {}]   ;;  %s3838_s8 = inlined_call_operand.vmem [shape: f32[8,144], index: 8, kind: input, shape index: {}]   ;;  %s3839_s6 = inlined_call_operand.vmem [shape: f32[3,144,128], index: 6, kind: input, shape index: {}]   ;;  %s3840_s11 = inlined_call_operand.vmem [shape: f32[1,8], index: 11, kind: input, shape index: {}]   ;;  %s3841_s12 = inlined_call_operand.vmem [shape: f32[1,8], index: 12, kind: input, shape index: {}]   ;;  %s3842_s9 = inlined_call_operand.vmem [shape: f32[128,8], index: 9, kind: input, shape index: {}]   ;;  %s3843_s10 = inlined_call_operand.vmem [shape: f32[8,128], index: 10, kind: input, shape index: {}]   ;;  %s3844_s13 = inlined_call_operand.vmem [shape: f32[1,8], index: 13, kind: input, shape index: {}]   ;;  %s3845_s14 = inlined_call_operand.vmem [shape: f32[1,8], index: 14, kind: input, shape index: {}]   ;;  %s3846_s15 = inlined_call_operand.vmem [shape: f32[32,128], index: 15, kind: output, shape index: {}]  }
   0x1   :  { %v59_v0 = vld [vmem:[%s3831_s3 + $0x38] sm:$0xff]  ;;  %v58_v1 = vld [vmem:[%s3831_s3 + $0x30] sm:$0xff]  ;;  %v57_v2 = vld [vmem:[%s3831_s3 + $0x28] sm:$0xff]  ;;  %131 = vmatprep.mubr.f32.mxu0 %v2644_v3  ;;  %372 = vst [vmem:[#allocation2] sm:$0xff] %v2644_v3  ;;  %245 = vmatprep.mubr.f32.mxu1 %v2644_v3  ;;  %vm377_vm3 = vcmask 123904   ;;  %vm419_vm4 = vcmask 130049  }
   0x2   :  { %376 = vst [vmem:[#allocation2 + $0x20] sm:$0x3] %v2644_v3  ;;  %379 = vst [vmem:[#allocation2 + $0x30] sm:$0xff] %v2644_v3  ;;  %91 = vmatprep.subr.mxu0 %v59_v0  ;;  %v56_v4 = vld [vmem:[%s3831_s3 + $0x20] sm:$0xff]  ;;  %v55_v5 = vld [vmem:[%s3831_s3 + $0x18] sm:$0xff]  ;;  %vm424_vm5 = vcmask 122880  }
   0x3   :  { %383 = vst [vmem:[#allocation2 + $0x50] sm:$0x3] %v2644_v3  ;;  %92 = vmatpush1.msra.mxu0 %v58_v1  ;;  %v54_v6 = vld [vmem:[%s3831_s3 + $0x10] sm:$0xff]  ;;  %v167_v7 = vld [vmem:[%s3832_s4 + $0x78] sm:$0xff]  ;;  %v53_v9 = vld [vmem:[%s3831_s3 + $0x8] sm:$0xff]  ;;  %vm393_vm6 = vcmask 1040384  }
   0x4   :  { %93 = vmatprep.subr.mxu0 %v57_v2  ;;  %v166_v8 = vld [vmem:[%s3832_s4 + $0x70] sm:$0xff]  ;;  %197 = vmatprep.subr.mxu1 %v167_v7  ;;  %v165_v10 = vld [vmem:[%s3832_s4 + $0x68] sm:$0xff]  ;;  %v164_v11 = vld [vmem:[%s3832_s4 + $0x60] sm:$0xff]  ;;  %373 = vst.msk [vmem:[#allocation2 + $0x8] sm:$0xff] %vm270_vm2, %v2644_v3  ;;  %vm496_vm7 = vcmask 1046528   ;;  %vm770_vm8 = vcmask 1045504  }
   0x5   :  { %94 = vmatpush1.msra.mxu0 %v56_v4  ;;  %v52_v12 = vld [vmem:[%s3831_s3] sm:$0xff]  ;;  %198 = vmatpush1.msra.mxu1 %v166_v8  ;;  %v163_v13 = vld [vmem:[%s3832_s4 + $0x58] sm:$0xff]  ;;  %v51_v15 = vld [vmem:[%s3833_s1 + $0x8] sm:$0xff]  ;;  %375 = vst.msk [vmem:[#allocation2 + $0x18] sm:$0xff] %vm270_vm2, %v2644_v3  ;;  %vm1053_vm9 = vcmask 64512   ;;  %vm2645_vm10 = vmmov 0  }
   0x6   :  { %95 = vmatprep.subr.mxu0 %v55_v5  ;;  %v50_v14 = vld [vmem:[%s3833_s1] sm:$0xff]  ;;  %199 = vmatprep.subr.mxu1 %v165_v10  ;;  %v162_v16 = vld [vmem:[%s3832_s4 + $0x50] sm:$0xff]  ;;  %v161_v17 = vld [vmem:[%s3832_s4 + $0x48] sm:$0xff]  ;;  %380 = vst.msk [vmem:[#allocation2 + $0x38] sm:$0xff] %vm270_vm2, %v2644_v3 }
   0x7   :  { %96 = vmatpush1.msra.mxu0 %v54_v6  ;;  %200 = vmatpush1.msra.mxu1 %v164_v11  ;;  %v160_v18 = vld [vmem:[%s3832_s4 + $0x40] sm:$0xff]  ;;  %v159_v19 = vld [vmem:[%s3832_s4 + $0x38] sm:$0xff]  ;;  %v158_v20 = vld [vmem:[%s3832_s4 + $0x30] sm:$0xff]  ;;  %382 = vst.msk [vmem:[#allocation2 + $0x48] sm:$0xff] %vm270_vm2, %v2644_v3 }
   0x8   :  { %97 = vmatprep.subr.mxu0 %v53_v9  ;;  %201 = vmatprep.subr.mxu1 %v163_v13  ;;  %v157_v21 = vld [vmem:[%s3832_s4 + $0x28] sm:$0xff]  ;;  %v156_v22 = vld [vmem:[%s3832_s4 + $0x20] sm:$0xff]  ;;  %v155_v23 = vld [vmem:[%s3832_s4 + $0x18] sm:$0xff]  ;;  %378 = vst.msk [vmem:[#allocation2 + $0x28] sm:$0x3] %vm377_vm3, %v2644_v3 }
   0x9   :  { %98 = vmatpush1.msra.mxu0 %v52_v12  ;;  %202 = vmatpush1.msra.mxu1 %v162_v16  ;;  %v154_v24 = vld [vmem:[%s3832_s4 + $0x10] sm:$0xff]  ;;  %v153_v25 = vld [vmem:[%s3832_s4 + $0x8] sm:$0xff]  ;;  %v152_v26 = vld [vmem:[%s3832_s4] sm:$0xff]  ;;  %384 = vst.msk [vmem:[#allocation2 + $0x58] sm:$0x3] %vm377_vm3, %v2644_v3 }
   0xa   :  { %2363 = vmatmul.mubr.msk.f32.vlgmr.msra.gmra.mxu0 %vm60_vm0, %v50_v14  ;;  %203 = vmatprep.subr.mxu1 %v161_v17  ;;  %v148_v27 = vld [vmem:[%s3834_s0] sm:$0xff]  ;;  %v149_v28 = vld [vmem:[%s3834_s0 + $0x8] sm:$0xff]  ;;  %v150_v29 = vld [vmem:[%s3834_s0 + $0x10] sm:$0xff] }
   0xb   :  { %137 = vmatprep.mubr.f32.mxu0 %v2644_v3  ;;  %204 = vmatpush1.msra.mxu1 %v160_v18  ;;  %v151_v30 = vld [vmem:[%s3834_s0 + $0x18] sm:$0xff]  ;;  %v470_v32 = vld [vmem:[%s3835_s5 + $0xf0] sm:$0xff]  ;;  %v469_v33 = vld [vmem:[%s3835_s5 + $0xe8] sm:$0xff] }
   0xc   :  { %205 = vmatprep.subr.mxu1 %v159_v19  ;;  %v471_v31 = vld [vmem:[%s3835_s5 + $0xf8] sm:$0xff]  ;;  %v468_v34 = vld [vmem:[%s3835_s5 + $0xe0] sm:$0xff]  ;;  %v466_v36 = vld [vmem:[%s3835_s5 + $0xd0] sm:$0xff] }
   0xd   :  { %206 = vmatpush1.msra.mxu1 %v158_v20  ;;  %v467_v35 = vld [vmem:[%s3835_s5 + $0xd8] sm:$0xff]  ;;  %v465_v37 = vld [vmem:[%s3835_s5 + $0xc8] sm:$0xff]  ;;  %v464_v38 = vld [vmem:[%s3835_s5 + $0xc0] sm:$0xff] }
   0xe   :  { %2364 = vmatmul.mubr.msk.f32.gmra.mxu0 %vm60_vm0, %v51_v15  ;;  %207 = vmatprep.subr.mxu1 %v157_v21  ;;  %v463_v39 = vld [vmem:[%s3835_s5 + $0xb8] sm:$0xff]  ;;  %v462_v40 = vld [vmem:[%s3835_s5 + $0xb0] sm:$0xff]  ;;  %v461_v41 = vld [vmem:[%s3835_s5 + $0xa8] sm:$0xff] }
   0xf   :  { %347 = vmatprep.mubr.f32.mxu0 %v2644_v3  ;;  %208 = vmatpush1.msra.mxu1 %v156_v22  ;;  %v460_v42 = vld [vmem:[%s3835_s5 + $0xa0] sm:$0xff]  ;;  %v459_v43 = vld [vmem:[%s3835_s5 + $0x98] sm:$0xff]  ;;  %v458_v44 = vld [vmem:[%s3835_s5 + $0x90] sm:$0xff] }
  0x10   :  { %209 = vmatprep.subr.mxu1 %v155_v23  ;;  %v457_v45 = vld [vmem:[%s3835_s5 + $0x88] sm:$0xff]  ;;  %v456_v46 = vld [vmem:[%s3835_s5 + $0x80] sm:$0xff]  ;;  %v455_v47 = vld [vmem:[%s3835_s5 + $0x78] sm:$0xff] }
  0x11   :  { %210 = vmatpush1.msra.mxu1 %v154_v24  ;;  %v454_v48 = vld [vmem:[%s3835_s5 + $0x70] sm:$0xff]  ;;  %v453_v49 = vld [vmem:[%s3835_s5 + $0x68] sm:$0xff]  ;;  %v452_v50 = vld [vmem:[%s3835_s5 + $0x60] sm:$0xff] }
  0x12   :  { %211 = vmatprep.subr.mxu1 %v153_v25  ;;  %v144_v55 = vld [vmem:[%s3836_s2] sm:$0xff]  ;;  %v2404_v56 = vld [vmem:[%s3835_s5 + $0x218] sm:$0xff]  ;;  %v2403_v57 = vld [vmem:[%s3835_s5 + $0x210] sm:$0xff] }
  0x13   :  { %212 = vmatpush1.msra.mxu1 %v152_v26  ;;  %v2402_v58 = vld [vmem:[%s3835_s5 + $0x208] sm:$0xff]  ;;  %v2401_v59 = vld [vmem:[%s3835_s5 + $0x200] sm:$0xff]  ;;  %v2400_v61 = vld [vmem:[%s3835_s5 + $0x1f8] sm:$0xff] }
  0x14   :  { %2365 = vmatmul.mubr.msk.f32.vlgmr.msra.gmra.mxu1 %vm168_vm1, %v148_v27  ;;  %665 = vmatprep.subr.mxu1 %v471_v31  ;;  %v145_v60 = vld [vmem:[%s3836_s2 + $0x8] sm:$0xff]  ;;  %v2399_v62 = vld [vmem:[%s3835_s5 + $0x1f0] sm:$0xff]  ;;  %v2397_v0 = vld [vmem:[%s3835_s5 + $0x1e0] sm:$0xff] }
  0x15   :  { %251 = vmatprep.mubr.f32.mxu1 %v2644_v3  ;;  %666 = vmatpush1.msra.mxu1 %v470_v32  ;;  %v2398_v63 = vld [vmem:[%s3835_s5 + $0x1e8] sm:$0xff]  ;;  %v146_v1 = vld [vmem:[%s3836_s2 + $0x10] sm:$0xff]  ;;  %v2396_v2 = vld [vmem:[%s3835_s5 + $0x1d8] sm:$0xff] }
  0x16   :  { %667 = vmatprep.subr.mxu1 %v469_v33  ;;  %v2395_v4 = vld [vmem:[%s3835_s5 + $0x1d0] sm:$0xff]  ;;  %v2394_v5 = vld [vmem:[%s3835_s5 + $0x1c8] sm:$0xff]  ;;  %v2393_v6 = vld [vmem:[%s3835_s5 + $0x1c0] sm:$0xff] }
  0x17   :  { %668 = vmatpush1.msra.mxu1 %v468_v34  ;;  %v147_v7 = vld [vmem:[%s3836_s2 + $0x18] sm:$0xff]  ;;  %v2391_v9 = vld [vmem:[%s3835_s5 + $0x1b0] sm:$0xff]  ;;  %v2390_v11 = vld [vmem:[%s3835_s5 + $0x1a8] sm:$0xff] }
  0x18   :  { %2366 = vmatmul.mubr.msk.f32.gmra.mxu1 %vm168_vm1, %v149_v28  ;;  %669 = vmatprep.subr.mxu1 %v467_v35  ;;  %v2392_v8 = vld [vmem:[%s3835_s5 + $0x1b8] sm:$0xff]  ;;  %v450_v12 = vld [vmem:[%s3835_s5 + $0x50] sm:$0xff]  ;;  %v2389_v13 = vld [vmem:[%s3835_s5 + $0x1a0] sm:$0xff] }
  0x19   :  { %257 = vmatprep.mubr.f32.mxu1 %v2644_v3  ;;  %670 = vmatpush1.msra.mxu1 %v466_v36  ;;  %v451_v10 = vld [vmem:[%s3835_s5 + $0x58] sm:$0xff]  ;;  %v449_v14 = vld [vmem:[%s3835_s5 + $0x48] sm:$0xff]  ;;  %v448_v16 = vld [vmem:[%s3835_s5 + $0x40] sm:$0xff] }
  0x1a   :  { %671 = vmatprep.subr.mxu1 %v465_v37  ;;  %v2388_v15 = vld [vmem:[%s3835_s5 + $0x198] sm:$0xff]  ;;  %v2387_v17 = vld [vmem:[%s3835_s5 + $0x190] sm:$0xff]  ;;  %v2386_v19 = vld [vmem:[%s3835_s5 + $0x188] sm:$0xff] }
  0x1b   :  { %672 = vmatpush1.msra.mxu1 %v464_v38  ;;  %v447_v18 = vld [vmem:[%s3835_s5 + $0x38] sm:$0xff]  ;;  %v446_v20 = vld [vmem:[%s3835_s5 + $0x30] sm:$0xff]  ;;  %v2385_v21 = vld [vmem:[%s3835_s5 + $0x180] sm:$0xff] }
  0x1c   :  { %2367 = vmatmul.mubr.msk.f32.gmra.mxu1 %vm168_vm1, %v150_v29  ;;  %673 = vmatprep.subr.mxu1 %v463_v39  ;;  %v445_v22 = vld [vmem:[%s3835_s5 + $0x28] sm:$0xff]  ;;  %v2384_v23 = vld [vmem:[%s3835_s5 + $0x178] sm:$0xff]  ;;  %v444_v24 = vld [vmem:[%s3835_s5 + $0x20] sm:$0xff] }
  0x1d   :  { %263 = vmatprep.mubr.f32.mxu1 %v2644_v3  ;;  %674 = vmatpush1.msra.mxu1 %v462_v40  ;;  %v2383_v25 = vld [vmem:[%s3835_s5 + $0x170] sm:$0xff]  ;;  %v443_v26 = vld [vmem:[%s3835_s5 + $0x18] sm:$0xff]  ;;  %v2382_v27 = vld [vmem:[%s3835_s5 + $0x168] sm:$0xff] }
  0x1e   :  { %675 = vmatprep.subr.mxu1 %v461_v41  ;;  %v442_v28 = vld [vmem:[%s3835_s5 + $0x10] sm:$0xff]  ;;  %v2381_v29 = vld [vmem:[%s3835_s5 + $0x160] sm:$0xff]  ;;  %v2380_v31 = vld [vmem:[%s3835_s5 + $0x158] sm:$0xff] }
  0x1f   :  { %676 = vmatpush1.msra.mxu1 %v460_v42  ;;  %v440_v32 = vld [vmem:[%s3835_s5] sm:$0xff]  ;;  %v2379_v33 = vld [vmem:[%s3835_s5 + $0x150] sm:$0xff]  ;;  %v475_v34 = vld [vmem:[%s3835_s5 + $0x118] sm:$0xff] }
  0x20   :  { %2368 = vmatmul.mubr.msk.f32.gmra.mxu1 %vm168_vm1, %v151_v30  ;;  %677 = vmatprep.subr.mxu1 %v459_v43  ;;  %v441_v30 = vld [vmem:[%s3835_s5 + $0x8] sm:$0xff]  ;;  %v474_v36 = vld [vmem:[%s3835_s5 + $0x110] sm:$0xff]  ;;  %v2377_v37 = vld [vmem:[%s3835_s5 + $0x140] sm:$0xff] }
  0x21   :  { %678 = vmatpush1.msra.mxu1 %v458_v44  ;;  %v2378_v35 = vld [vmem:[%s3835_s5 + $0x148] sm:$0xff]  ;;  %v2376_v39 = vld [vmem:[%s3835_s5 + $0x138] sm:$0xff]  ;;  %v472_v40 = vld [vmem:[%s3835_s5 + $0x100] sm:$0xff] }
  0x22   :  { %679 = vmatprep.subr.mxu1 %v457_v45  ;;  %v473_v38 = vld [vmem:[%s3835_s5 + $0x108] sm:$0xff]  ;;  %v2375_v41 = vld [vmem:[%s3835_s5 + $0x130] sm:$0xff]  ;;  %v2373_v43 = vld [vmem:[%s3835_s5 + $0x120] sm:$0xff] }
  0x23   :  { %680 = vmatpush1.msra.mxu1 %v456_v46  ;;  %v2374_v42 = vld [vmem:[%s3835_s5 + $0x128] sm:$0xff]  ;;  %v2408_v44 = vld [vmem:[%s3835_s5 + $0x238] sm:$0xff]  ;;  %v2407_v45 = vld [vmem:[%s3835_s5 + $0x230] sm:$0xff] }
  0x24   :  { %681 = vmatprep.subr.mxu1 %v455_v47  ;;  %v2406_v46 = vld [vmem:[%s3835_s5 + $0x228] sm:$0xff]  ;;  %v2405_v47 = vld [vmem:[%s3835_s5 + $0x220] sm:$0xff] }
  0x25   :  { %682 = vmatpush1.msra.mxu1 %v454_v48  ;;  %v2448_v48 = vld [vmem:[%s3835_s5 + $0x338] sm:$0xff] }
  0x26   :  { %683 = vmatprep.subr.mxu1 %v453_v49 }
  0x27   :  { %684 = vmatpush1.msra.mxu1 %v452_v50 }
  0x28   :  { %685 = vmatprep.subr.mxu1 %v451_v10 }
  0x29   :  { %686 = vmatpush1.msra.mxu1 %v450_v12 }
  0x2a   :  { %687 = vmatprep.subr.mxu1 %v449_v14 }
  0x2b   :  { %688 = vmatpush1.msra.mxu1 %v448_v16 }
  0x2c   :  { %689 = vmatprep.subr.mxu1 %v447_v18 }
  0x2d   :  { %690 = vmatpush1.msra.mxu1 %v446_v20 }
  0x2e   :  { %691 = vmatprep.subr.mxu1 %v445_v22 }
  0x2f   :  { %692 = vmatpush1.msra.mxu1 %v444_v24 }
  0x30   :  { %693 = vmatprep.subr.mxu1 %v443_v26 }
  0x31   :  { %694 = vmatpush1.msra.mxu1 %v442_v28 }
  0x32   :  { %695 = vmatprep.subr.mxu1 %v441_v30 }
  0x33   :  { %696 = vmatpush1.msra.mxu1 %v440_v32 }
  0x34   :  { %725 = vmatprep.subr.mxu1 %v475_v34 }
  0x35   :  { %726 = vmatpush2.msra.mxu1 %v474_v36 }
  0x36   :  { %727 = vmatprep.subr.mxu1 %v473_v38 }
  0x37   :  { %728 = vmatpush2.msra.mxu1 %v472_v40 }
  0x38   :  { %980 = vmatprep.subr.mxu1 %v2644_v3 }
  0xca   :  { %v133_v51 = vpop.f32.mrf.mxu0 }
  0xcc   :  { %v135_v52 = vpop.f32.mrf.mxu0 }
  0xce   :  { %v139_v53 = vpop.f32.mrf.mxu0 }
  0xd0   :  { %v141_v54 = vpop.f32.mrf.mxu0 }
  0xd1   :  { %311 = vmatprep.subr.mxu0 %v141_v54 }
  0xd2   :  { %312 = vmatpush1.msra.mxu0 %v139_v53 }
  0xd3   :  { %313 = vmatprep.subr.mxu0 %v135_v52 }
  0xd4   :  { %314 = vmatpush1.msra.mxu0 %v133_v51  ;;  %v247_v49 = vpop.f32.mrf.mxu1 }
  0xd5   :  { %2369 = vmatmul.mubr.msk.f32.vlgmr.msra.gmra.mxu0 %vm270_vm2, %v144_v55  ;;  %566 = vmatprep.subr.mxu0 %v2404_v56 }
  0xd6   :  { %353 = vmatprep.mubr.f32.mxu0 %v2644_v3  ;;  %567 = vmatpush1.msra.mxu0 %v2403_v57  ;;  %v249_v50 = vpop.f32.mrf.mxu1 }
  0xd7   :  { %568 = vmatprep.subr.mxu0 %v2402_v58 }
  0xd8   :  { %569 = vmatpush1.msra.mxu0 %v2401_v59  ;;  %v253_v51 = vpop.f32.mrf.mxu1 }
  0xd9   :  { %2370 = vmatmul.mubr.msk.f32.gmra.mxu0 %vm270_vm2, %v145_v60  ;;  %570 = vmatprep.subr.mxu0 %v2400_v61 }
  0xda   :  { %359 = vmatprep.mubr.f32.mxu0 %v2644_v3  ;;  %571 = vmatpush1.msra.mxu0 %v2399_v62  ;;  %v255_v52 = vpop.f32.mrf.mxu1 }
  0xdb   :  { %572 = vmatprep.subr.mxu0 %v2398_v63 }
  0xdc   :  { %573 = vmatpush1.msra.mxu0 %v2397_v0  ;;  %v259_v54 = vpop.f32.mrf.mxu1 }
  0xdd   :  { %2371 = vmatmul.mubr.msk.f32.gmra.mxu0 %vm270_vm2, %v146_v1  ;;  %574 = vmatprep.subr.mxu0 %v2396_v2 }
  0xde   :  { %365 = vmatprep.mubr.f32.mxu0 %v2644_v3  ;;  %575 = vmatpush1.msra.mxu0 %v2395_v4  ;;  %v261_v60 = vpop.f32.mrf.mxu1 }
  0xdf   :  { %576 = vmatprep.subr.mxu0 %v2394_v5 }
  0xe0   :  { %577 = vmatpush1.msra.mxu0 %v2393_v6  ;;  %v265_v4 = vpop.f32.mrf.mxu1 }
  0xe1   :  { %2372 = vmatmul.mubr.msk.f32.gmra.mxu0 %vm270_vm2, %v147_v7  ;;  %578 = vmatprep.subr.mxu0 %v2392_v8 }
  0xe2   :  { %579 = vmatpush1.msra.mxu0 %v2391_v9  ;;  %v267_v12 = vpop.f32.mrf.mxu1 }
  0xe3   :  { %580 = vmatprep.subr.mxu0 %v2390_v11 }
  0xe4   :  { %581 = vmatpush1.msra.mxu0 %v2389_v13 }
  0xe5   :  { %582 = vmatprep.subr.mxu0 %v2388_v15 }
  0xe6   :  { %583 = vmatpush1.msra.mxu0 %v2387_v17 }
  0xe7   :  { %584 = vmatprep.subr.mxu0 %v2386_v19 }
  0xe8   :  { %585 = vmatpush1.msra.mxu0 %v2385_v21 }
  0xe9   :  { %586 = vmatprep.subr.mxu0 %v2384_v23 }
  0xea   :  { %587 = vmatpush1.msra.mxu0 %v2383_v25 }
  0xeb   :  { %588 = vmatprep.subr.mxu0 %v2382_v27 }
  0xec   :  { %589 = vmatpush1.msra.mxu0 %v2381_v29 }
  0xed   :  { %590 = vmatprep.subr.mxu0 %v2380_v31 }
  0xee   :  { %591 = vmatpush1.msra.mxu0 %v2379_v33 }
  0xef   :  { %592 = vmatprep.subr.mxu0 %v2378_v35  ;;  %v2447_v35 = vld [vmem:[%s3835_s5 + $0x330] sm:$0xff] }
  0xf0   :  { %593 = vmatpush1.msra.mxu0 %v2377_v37 }
  0xf1   :  { %594 = vmatprep.subr.mxu0 %v2376_v39  ;;  %v2446_v39 = vld [vmem:[%s3835_s5 + $0x328] sm:$0xff] }
  0xf2   :  { %595 = vmatpush1.msra.mxu0 %v2375_v41 }
  0xf3   :  { %596 = vmatprep.subr.mxu0 %v2374_v42 }
  0xf4   :  { %597 = vmatpush1.msra.mxu0 %v2373_v43 }
  0xf5   :  { %626 = vmatprep.subr.mxu0 %v2408_v44  ;;  %v2445_v44 = vld [vmem:[%s3835_s5 + $0x320] sm:$0xff] }
  0xf6   :  { %627 = vmatpush2.msra.mxu0 %v2407_v45  ;;  %v2444_v45 = vld [vmem:[%s3835_s5 + $0x318] sm:$0xff] }
  0xf7   :  { %628 = vmatprep.subr.mxu0 %v2406_v46 }
  0xf8   :  { %629 = vmatpush2.msra.mxu0 %v2405_v47 }
  0xf9   :  { %840 = vmatprep.subr.mxu0 %v2448_v48  ;;  %v2443_v48 = vld [vmem:[%s3835_s5 + $0x310] sm:$0xff] }
 0x195   :  { %v349_v53 = vpop.f32.mrf.mxu0 }
 0x196   :  { %v350_v55 = vadd.f32 %v349_v53, %v247_v49  ;;  %v2442_v53 = vld [vmem:[%s3835_s5 + $0x308] sm:$0xff] }
 0x197   :  { %v351_v56 = vpop.f32.mrf.mxu0 }
 0x198   :  { %v394_v57 = vrot.slane %v350_v55, 7  ;;  %v352_v58 = vadd.f32 %v351_v56, %v249_v50  ;;  %v2441_v56 = vld [vmem:[%s3835_s5 + $0x300] sm:$0xff] }
 0x199   :  { %v355_v59 = vpop.f32.mrf.mxu0 }
 0x19a   :  { %418 = vst [vmem:[#allocation2] sm:$0xfe] %v394_v57  ;;  %v395_v61 = vrot.slane %v352_v58, 7  ;;  %v356_v62 = vadd.f32 %v355_v59, %v253_v51  ;;  %v2440_v58 = vld [vmem:[%s3835_s5 + $0x2f8] sm:$0xff] }
 0x19b   :  { %v357_v63 = vpop.f32.mrf.mxu0 }
 0x19c   :  { %420 = vst.msk [vmem:[#allocation2 + $0x8] sm:$0xfe] %vm419_vm4, %v395_v61  ;;  %v396_v0 = vrot.slane %v356_v62, 7  ;;  %v358_v1 = vadd.f32 %v357_v63, %v255_v52  ;;  %v2439_v62 = vld [vmem:[%s3835_s5 + $0x2f0] sm:$0xff] }
 0x19d   :  { %v361_v2 = vpop.f32.mrf.mxu0 }
 0x19e   :  { %423 = vst [vmem:[#allocation2 + $0x20] sm:$0x1] %v396_v0  ;;  %v398_v5 = vrot.slane %v358_v1, 7  ;;  %v362_v6 = vadd.f32 %v361_v2, %v259_v54  ;;  %v3083_v23 = vsel %vm393_vm6, %v394_v57, %v396_v0  ;;  %v2438_v0 = vld [vmem:[%s3835_s5 + $0x2e8] sm:$0xff] }
 0x19f   :  { %v363_v7 = vpop.f32.mrf.mxu0  ;;  %v498_v32 = vrot.slane %v3083_v23, 1 }
 0x1a0   :  { %v399_v8 = vsel %vm393_vm6, %v395_v61, %v398_v5  ;;  %425 = vst.msk [vmem:[#allocation2 + $0x28] sm:$0x1] %vm424_vm5, %v398_v5  ;;  %v400_v9 = vrot.slane %v362_v6, 7  ;;  %v364_v10 = vadd.f32 %v363_v7, %v261_v60  ;;  %v2436_v5 = vld [vmem:[%s3835_s5 + $0x2d8] sm:$0xff]  ;;  %v2435_v7 = vld [vmem:[%s3835_s5 + $0x2d0] sm:$0xff] }
 0x1a1   :  { %422 = vst.msk [vmem:[#allocation2 + $0x18] sm:$0xff] %vm270_vm2, %v399_v8  ;;  %v367_v11 = vpop.f32.mrf.mxu0  ;;  %v432_v19 = vld [vmem:[#allocation2] sm:$0xff] }
 0x1a2   :  { %426 = vst [vmem:[#allocation2 + $0x30] sm:$0xfe] %v400_v9  ;;  %v401_v13 = vrot.slane %v364_v10, 7  ;;  %v368_v14 = vadd.f32 %v367_v11, %v265_v4  ;;  %v476_v20 = vld [vmem:[#allocation2] sm:$0xfe] }
 0x1a3   :  { %v369_v15 = vpop.f32.mrf.mxu0  ;;  %v433_v16 = vld [vmem:[#allocation2 + $0x8] sm:$0xff]  ;;  %v497_v27 = vrot.slane %v476_v20, 1  ;;  %v2437_v4 = vld [vmem:[%s3835_s5 + $0x2e0] sm:$0xff]  ;;  %v2424_v20 = vld [vmem:[%s3835_s5 + $0x278] sm:$0xff] }
 0x1a4   :  { %427 = vst.msk [vmem:[#allocation2 + $0x38] sm:$0xfe] %vm419_vm4, %v401_v13  ;;  %v402_v17 = vrot.slane %v368_v14, 7  ;;  %v370_v18 = vadd.f32 %v369_v15, %v267_v12  ;;  %2413 = vmatprep.mubr.msk.f32.mxu1 %vm270_vm2, %v433_v16  ;;  %v477_v22 = vld [vmem:[#allocation2 + $0x8] sm:$0xfe]  ;;  %v2433_v11 = vld [vmem:[%s3835_s5 + $0x2c0] sm:$0xff] }
 0x1a5   :  { %730 = vmatmul.mubr.f32.vlgmr.msra.gmra.mxu1 %v432_v19  ;;  %v500_v29 = vrot.slane %v477_v22, 1  ;;  %v478_v31 = vld [vmem:[#allocation2 + $0x20] sm:$0x1]  ;;  %v499_v38 = vsel %vm496_vm7, %v497_v27, %v498_v32  ;;  %v755_v1 = vld [vmem:[#allocation2 + $0x8] sm:$0xfc]  ;;  %v2432_v12 = vld [vmem:[%s3835_s5 + $0x2b8] sm:$0xff] }
 0x1a6   :  { %430 = vst [vmem:[#allocation2 + $0x50] sm:$0x1] %v402_v17  ;;  %v404_v21 = vrot.slane %v370_v18, 7  ;;  %v3096_v33 = vsel %vm393_vm6, %v400_v9, %v402_v17  ;;  %v503_v40 = vrot.slane %v478_v31, 1  ;;  %v774_v8 = vrot.slane %v755_v1, 2  ;;  %v2434_v9 = vld [vmem:[%s3835_s5 + $0x2c8] sm:$0xff] }
 0x1a7   :  { %v479_v24 = vld [vmem:[#allocation2 + $0x28] sm:$0x1]  ;;  %v508_v47 = vrot.slane %v3096_v33, 1  ;;  %v2429_v15 = vld [vmem:[%s3835_s5 + $0x2a0] sm:$0xff]  ;;  %v2428_v16 = vld [vmem:[%s3835_s5 + $0x298] sm:$0xff] }
 0x1a8   :  { %v405_v25 = vsel %vm393_vm6, %v401_v13, %v404_v21  ;;  %431 = vst.msk [vmem:[#allocation2 + $0x58] sm:$0x1] %vm424_vm5, %v404_v21  ;;  %v3087_v26 = vld [vmem:[#allocation2 + $0x18] sm:$0xff]  ;;  %v505_v30 = vrot.slane %v479_v24, 1  ;;  %v504_v52 = vsel %vm496_vm7, %v498_v32, %v503_v40  ;;  %v2431_v13 = vld [vmem:[%s3835_s5 + $0x2b0] sm:$0xff]  ;;  %v2430_v14 = vld [vmem:[%s3835_s5 + $0x2a8] sm:$0xff] }
 0x1a9   :  { %429 = vst.msk [vmem:[#allocation2 + $0x48] sm:$0xff] %vm270_vm2, %v405_v25  ;;  %v501_v28 = vrot.slane %v3087_v26, 1  ;;  %2414 = vmatprep.mubr.msk.f32.mxu1 %vm270_vm2, %v3087_v26  ;;  %v480_v36 = vld [vmem:[#allocation2 + $0x30] sm:$0xfe]  ;;  %v775_v2 = vrot.slane %v3087_v26, 2  ;;  %v2426_v18 = vld [vmem:[%s3835_s5 + $0x288] sm:$0xff] }
 0x1aa   :  { %736 = vmatmul.mubr.f32.gmra.mxu1 %v3083_v23  ;;  %v436_v42 = vld [vmem:[#allocation2 + $0x30] sm:$0xff]  ;;  %v507_v46 = vrot.slane %v480_v36, 1  ;;  %v2425_v19 = vld [vmem:[%s3835_s5 + $0x280] sm:$0xff]  ;;  %v2422_v22 = vld [vmem:[%s3835_s5 + $0x268] sm:$0xff]  ;;  %v772_v40 = vrot.slane %v3083_v23, 2 }
 0x1ab   :  { %v502_v34 = vsel %vm496_vm7, %v500_v29, %v501_v28  ;;  %v437_v37 = vld [vmem:[#allocation2 + $0x38] sm:$0xff]  ;;  %v506_v43 = vsel %vm496_vm7, %v501_v28, %v505_v30  ;;  %v776_v10 = vsel %vm770_vm8, %v774_v8, %v775_v2  ;;  %v2427_v17 = vld [vmem:[%s3835_s5 + $0x290] sm:$0xff]  ;;  %v2421_v24 = vld [vmem:[%s3835_s5 + $0x260] sm:$0xff] }
 0x1ac   :  { %2409 = vmatprep.mubr.msk.f32.mxu0 %vm270_vm2, %v502_v34  ;;  %v481_v41 = vld [vmem:[#allocation2 + $0x38] sm:$0xfe]  ;;  %2415 = vmatprep.mubr.msk.f32.mxu1 %vm270_vm2, %v437_v37  ;;  %v509_v59 = vsel %vm496_vm7, %v507_v46, %v508_v47  ;;  %v2423_v21 = vld [vmem:[%s3835_s5 + $0x270] sm:$0xff]  ;;  %v2418_v28 = vld [vmem:[%s3835_s5 + $0x248] sm:$0xff] }
 0x1ad   :  { %631 = vmatmul.mubr.f32.vlgmr.msra.gmra.mxu0 %v499_v38  ;;  %v510_v49 = vrot.slane %v481_v41, 1  ;;  %v482_v51 = vld [vmem:[#allocation2 + $0x50] sm:$0x1]  ;;  %v2420_v25 = vld [vmem:[%s3835_s5 + $0x258] sm:$0xff]  ;;  %v2417_v29 = vld [vmem:[%s3835_s5 + $0x240] sm:$0xff] }
 0x1ae   :  { %841 = vmatpush1.msra.mxu0 %v2447_v35  ;;  %2410 = vmatprep.mubr.msk.f32.mxu0 %vm270_vm2, %v506_v43  ;;  %v513_v60 = vrot.slane %v482_v51, 1  ;;  %v2419_v27 = vld [vmem:[%s3835_s5 + $0x250] sm:$0xff]  ;;  %v754_v30 = vld [vmem:[#allocation2] sm:$0xfc]  ;;  %v2452_v31 = vld [vmem:[%s3835_s5 + $0x358] sm:$0xff] }
 0x1af   :  { %842 = vmatprep.subr.mxu0 %v2446_v39  ;;  %v483_v50 = vld [vmem:[#allocation2 + $0x58] sm:$0x1]  ;;  %742 = vmatmul.mubr.f32.gmra.mxu1 %v436_v42  ;;  %v757_v32 = vld [vmem:[#allocation2 + $0x28] sm:$0x3]  ;;  %v2451_v34 = vld [vmem:[%s3835_s5 + $0x350] sm:$0xff]  ;;  %v771_v36 = vrot.slane %v754_v30, 2 }
 0x1b0   :  { %843 = vmatpush1.msra.mxu0 %v2445_v44  ;;  %v3124_v54 = vld [vmem:[#allocation2 + $0x48] sm:$0xff]  ;;  %v515_v55 = vrot.slane %v483_v50, 1  ;;  %v514_v6 = vsel %vm496_vm7, %v508_v47, %v513_v60  ;;  %v2449_v37 = vld [vmem:[%s3835_s5 + $0x340] sm:$0xff]  ;;  %v779_v38 = vrot.slane %v757_v32, 2  ;;  %v759_v41 = vld [vmem:[#allocation2 + $0x38] sm:$0xfc] }
 0x1b1   :  { %844 = vmatprep.subr.mxu0 %v2444_v45  ;;  %637 = vmatmul.mubr.f32.gmra.mxu0 %v504_v52  ;;  %v511_v57 = vrot.slane %v3124_v54, 1  ;;  %v2450_v35 = vld [vmem:[%s3835_s5 + $0x348] sm:$0xff]  ;;  %v756_v39 = vld [vmem:[#allocation2 + $0x20] sm:$0x3]  ;;  %v773_v42 = vsel %vm770_vm8, %v771_v36, %v772_v40  ;;  %v784_v45 = vrot.slane %v759_v41, 2  ;;  %v785_v46 = vrot.slane %v3124_v54, 2 }
 0x1b2   :  { %845 = vmatpush1.msra.mxu0 %v2443_v48  ;;  %2416 = vmatprep.mubr.msk.f32.mxu1 %vm270_vm2, %v3124_v54  ;;  %v777_v43 = vrot.slane %v756_v39, 2  ;;  %v780_v44 = vsel %vm770_vm8, %v775_v2, %v779_v38  ;;  %v758_v47 = vld [vmem:[#allocation2 + $0x30] sm:$0xfc]  ;;  %v761_v23 = vld [vmem:[#allocation2 + $0x58] sm:$0x3]  ;;  %v782_v50 = vrot.slane %v3096_v33, 2 }
 0x1b3   :  { %846 = vmatprep.subr.mxu0 %v2442_v53  ;;  %v512_v61 = vsel %vm496_vm7, %v510_v49, %v511_v57  ;;  %v516_v63 = vsel %vm496_vm7, %v511_v57, %v515_v55  ;;  %748 = vmatmul.mubr.f32.gmra.mxu1 %v3096_v33  ;;  %v781_v49 = vrot.slane %v758_v47, 2  ;;  %v786_v51 = vsel %vm770_vm8, %v784_v45, %v785_v46  ;;  %v760_v52 = vld [vmem:[#allocation2 + $0x50] sm:$0x3]  ;;  %v974_v33 = vld [vmem:[%s3837_s7 + $0x78] sm:$0xff]  ;;  %v964_v2 = vld [vmem:[%s3837_s7 + $0x28] sm:$0xff] }
 0x1b4   :  { %847 = vmatpush1.msra.mxu0 %v2441_v56  ;;  %2411 = vmatprep.mubr.msk.f32.mxu0 %vm270_vm2, %v512_v61  ;;  %v778_v48 = vsel %vm770_vm8, %v772_v40, %v777_v43  ;;  %v789_v26 = vrot.slane %v761_v23, 2  ;;  %v787_v54 = vrot.slane %v760_v52, 2  ;;  %v973_v57 = vld [vmem:[%s3837_s7 + $0x70] sm:$0xff]  ;;  %v970_v60 = vld [vmem:[%s3837_s7 + $0x58] sm:$0xff]  ;;  %v959_v8 = vld [vmem:[%s3837_s7] sm:$0xff] }
 0x1b5   :  { %848 = vmatprep.subr.mxu0 %v2440_v58  ;;  %643 = vmatmul.mubr.f32.gmra.mxu0 %v509_v59  ;;  %v783_v53 = vsel %vm770_vm8, %v781_v49, %v782_v50  ;;  %v972_v58 = vld [vmem:[%s3837_s7 + $0x68] sm:$0xff]  ;;  %v971_v59 = vld [vmem:[%s3837_s7 + $0x60] sm:$0xff]  ;;  %v969_v61 = vld [vmem:[%s3837_s7 + $0x50] sm:$0xff] }
 0x1b6   :  { %849 = vmatpush1.msra.mxu0 %v2439_v62  ;;  %2412 = vmatprep.mubr.msk.f32.mxu0 %vm270_vm2, %v516_v63  ;;  %v790_v55 = vsel %vm770_vm8, %v785_v46, %v789_v26  ;;  %v788_v56 = vsel %vm770_vm8, %v782_v50, %v787_v54  ;;  %v968_v62 = vld [vmem:[%s3837_s7 + $0x48] sm:$0xff]  ;;  %v967_v63 = vld [vmem:[%s3837_s7 + $0x40] sm:$0xff]  ;;  %v965_v1 = vld [vmem:[%s3837_s7 + $0x30] sm:$0xff] }
 0x1b7   :  { %850 = vmatprep.subr.mxu0 %v2438_v0  ;;  %981 = vmatpush1.msra.mxu1 %v974_v33  ;;  %v966_v0 = vld [vmem:[%s3837_s7 + $0x38] sm:$0xff] }
 0x1b8   :  { %851 = vmatpush1.msra.mxu0 %v2437_v4  ;;  %982 = vmatprep.subr.mxu1 %v2644_v3  ;;  %v963_v4 = vld [vmem:[%s3837_s7 + $0x20] sm:$0xff] }
 0x1b9   :  { %852 = vmatprep.subr.mxu0 %v2436_v5  ;;  %649 = vmatmul.mubr.f32.gmra.mxu0 %v514_v6  ;;  %v962_v5 = vld [vmem:[%s3837_s7 + $0x18] sm:$0xff]  ;;  %v961_v6 = vld [vmem:[%s3837_s7 + $0x10] sm:$0xff] }
 0x1ba   :  { %853 = vmatpush1.msra.mxu0 %v2435_v7  ;;  %2453 = vmatprep.mubr.msk.f32.mxu0 %vm270_vm2, %v776_v10  ;;  %v960_v7 = vld [vmem:[%s3837_s7 + $0x8] sm:$0xff]  ;;  %v975_v10 = vld [vmem:[%s3837_s7 + $0x80] sm:$0xff] }
 0x1bb   :  { %854 = vmatprep.subr.mxu0 %v2434_v9  ;;  %983 = vmatpush1.msra.mxu1 %v973_v57  ;;  %v976_v9 = vld [vmem:[%s3837_s7 + $0x88] sm:$0xff] }
 0x1bc   :  { %855 = vmatpush1.msra.mxu0 %v2433_v11  ;;  %984 = vmatprep.subr.mxu1 %v2644_v3 }
 0x1bd   :  { %856 = vmatprep.subr.mxu0 %v2432_v12  ;;  %985 = vmatpush1.msra.mxu1 %v972_v58 }
 0x1be   :  { %857 = vmatpush1.msra.mxu0 %v2431_v13  ;;  %986 = vmatprep.subr.mxu1 %v2644_v3 }
 0x1bf   :  { %858 = vmatprep.subr.mxu0 %v2430_v14  ;;  %987 = vmatpush1.msra.mxu1 %v971_v59 }
 0x1c0   :  { %859 = vmatpush1.msra.mxu0 %v2429_v15  ;;  %988 = vmatprep.subr.mxu1 %v2644_v3 }
 0x1c1   :  { %860 = vmatprep.subr.mxu0 %v2428_v16  ;;  %989 = vmatpush1.msra.mxu1 %v970_v60 }
 0x1c2   :  { %861 = vmatpush1.msra.mxu0 %v2427_v17  ;;  %990 = vmatprep.subr.mxu1 %v2644_v3 }
 0x1c3   :  { %862 = vmatprep.subr.mxu0 %v2426_v18  ;;  %991 = vmatpush1.msra.mxu1 %v969_v61 }
 0x1c4   :  { %863 = vmatpush1.msra.mxu0 %v2425_v19  ;;  %992 = vmatprep.subr.mxu1 %v2644_v3 }
 0x1c5   :  { %864 = vmatprep.subr.mxu0 %v2424_v20  ;;  %993 = vmatpush1.msra.mxu1 %v968_v62 }
 0x1c6   :  { %865 = vmatpush1.msra.mxu0 %v2423_v21  ;;  %994 = vmatprep.subr.mxu1 %v2644_v3 }
 0x1c7   :  { %866 = vmatprep.subr.mxu0 %v2422_v22  ;;  %995 = vmatpush1.msra.mxu1 %v967_v63 }
 0x1c8   :  { %867 = vmatpush1.msra.mxu0 %v2421_v24  ;;  %996 = vmatprep.subr.mxu1 %v2644_v3 }
 0x1c9   :  { %868 = vmatprep.subr.mxu0 %v2420_v25  ;;  %997 = vmatpush1.msra.mxu1 %v966_v0 }
 0x1ca   :  { %869 = vmatpush1.msra.mxu0 %v2419_v27  ;;  %998 = vmatprep.subr.mxu1 %v2644_v3 }
 0x1cb   :  { %870 = vmatprep.subr.mxu0 %v2418_v28  ;;  %999 = vmatpush1.msra.mxu1 %v965_v1 }
 0x1cc   :  { %871 = vmatpush1.msra.mxu0 %v2417_v29  ;;  %1000 = vmatprep.subr.mxu1 %v2644_v3 }
 0x1cd   :  { %900 = vmatprep.subr.mxu0 %v2452_v31  ;;  %1001 = vmatpush1.msra.mxu1 %v964_v2 }
 0x1ce   :  { %901 = vmatpush2.msra.mxu0 %v2451_v34  ;;  %1002 = vmatprep.subr.mxu1 %v2644_v3 }
 0x1cf   :  { %902 = vmatprep.subr.mxu0 %v2450_v35  ;;  %1003 = vmatpush1.msra.mxu1 %v963_v4 }
 0x1d0   :  { %903 = vmatpush2.msra.mxu0 %v2449_v37  ;;  %1004 = vmatprep.subr.mxu1 %v2644_v3 }
 0x1d1   :  { %905 = vmatmul.mubr.f32.vlgmr.msra.gmra.mxu0 %v773_v42  ;;  %1177 = vmatprep.subr.mxu0 %v2644_v3 }
 0x1d2   :  { %2454 = vmatprep.mubr.msk.f32.mxu0 %vm270_vm2, %v780_v44  ;;  %1178 = vmatpush1.msra.mxu0 %v974_v33 }
 0x1d3   :  { %1179 = vmatprep.subr.mxu0 %v2644_v3  ;;  %1005 = vmatpush1.msra.mxu1 %v962_v5 }
 0x1d4   :  { %1180 = vmatpush1.msra.mxu0 %v973_v57  ;;  %1006 = vmatprep.subr.mxu1 %v2644_v3 }
 0x1d5   :  { %911 = vmatmul.mubr.f32.gmra.mxu0 %v778_v48  ;;  %1181 = vmatprep.subr.mxu0 %v2644_v3 }
 0x1d6   :  { %2455 = vmatprep.mubr.msk.f32.mxu0 %vm270_vm2, %v786_v51  ;;  %1182 = vmatpush1.msra.mxu0 %v972_v58 }
 0x1d7   :  { %1183 = vmatprep.subr.mxu0 %v2644_v3  ;;  %1007 = vmatpush1.msra.mxu1 %v961_v6 }
 0x1d8   :  { %1184 = vmatpush1.msra.mxu0 %v971_v59  ;;  %1008 = vmatprep.subr.mxu1 %v2644_v3 }
 0x1d9   :  { %917 = vmatmul.mubr.f32.gmra.mxu0 %v783_v53  ;;  %1185 = vmatprep.subr.mxu0 %v2644_v3 }
 0x1da   :  { %2456 = vmatprep.mubr.msk.f32.mxu0 %vm270_vm2, %v790_v55  ;;  %1186 = vmatpush1.msra.mxu0 %v970_v60 }
 0x1db   :  { %1187 = vmatprep.subr.mxu0 %v2644_v3  ;;  %1009 = vmatpush1.msra.mxu1 %v960_v7 }
 0x1dc   :  { %1188 = vmatpush1.msra.mxu0 %v969_v61  ;;  %1010 = vmatprep.subr.mxu1 %v2644_v3 }
 0x1dd   :  { %923 = vmatmul.mubr.f32.gmra.mxu0 %v788_v56  ;;  %1189 = vmatprep.subr.mxu0 %v2644_v3 }
 0x1de   :  { %1190 = vmatpush1.msra.mxu0 %v968_v62  ;;  %1011 = vmatpush1.msra.mxu1 %v959_v8 }
 0x1df   :  { %1191 = vmatprep.subr.mxu0 %v2644_v3  ;;  %1040 = vmatprep.subr.mxu1 %v2644_v3 }
 0x1e0   :  { %1192 = vmatpush1.msra.mxu0 %v967_v63  ;;  %1041 = vmatpush2.msra.mxu1 %v976_v9 }
 0x1e1   :  { %1193 = vmatprep.subr.mxu0 %v2644_v3  ;;  %1042 = vmatprep.subr.mxu1 %v2644_v3 }
 0x1e2   :  { %1194 = vmatpush1.msra.mxu0 %v966_v0  ;;  %1043 = vmatpush2.msra.mxu1 %v975_v10 }
 0x1e3   :  { %1195 = vmatprep.subr.mxu0 %v2644_v3 }
 0x1e4   :  { %1196 = vmatpush1.msra.mxu0 %v965_v1 }
 0x1e5   :  { %1197 = vmatprep.subr.mxu0 %v2644_v3 }
 0x1e6   :  { %1198 = vmatpush1.msra.mxu0 %v964_v2 }
 0x1e7   :  { %1199 = vmatprep.subr.mxu0 %v2644_v3 }
 0x1e8   :  { %1200 = vmatpush1.msra.mxu0 %v963_v4 }
 0x1e9   :  { %1201 = vmatprep.subr.mxu0 %v2644_v3 }
 0x1ea   :  { %1202 = vmatpush1.msra.mxu0 %v962_v5 }
 0x1eb   :  { %1203 = vmatprep.subr.mxu0 %v2644_v3 }
 0x1ec   :  { %1204 = vmatpush1.msra.mxu0 %v961_v6 }
 0x1ed   :  { %1205 = vmatprep.subr.mxu0 %v2644_v3 }
 0x1ee   :  { %1206 = vmatpush1.msra.mxu0 %v960_v7 }
 0x1ef   :  { %1207 = vmatprep.subr.mxu0 %v2644_v3 }
 0x1f0   :  { %1208 = vmatpush1.msra.mxu0 %v959_v8 }
 0x1f1   :  { %1237 = vmatprep.subr.mxu0 %v2644_v3 }
 0x1f2   :  { %1238 = vmatpush2.msra.mxu0 %v976_v9 }
 0x1f3   :  { %1239 = vmatprep.subr.mxu0 %v2644_v3 }
 0x1f4   :  { %1240 = vmatpush2.msra.mxu0 %v975_v10  ;;  %v1052_v10 = vld [vmem:[%s3838_s8 + $0x8] sm:$0xff] }
 0x1f5   :  { %1679 = vmatprep.subr.mxu0 %v2644_v3  ;;  %1087 = vmatprep.subr.mxu1 %v1052_v10 }
 0x265   :  { %v731_v15 = vpop.f32.mrf.mxu1 }
 0x267   :  { %v733_v17 = vpop.f32.mrf.mxu1 }
 0x26a   :  { %v737_v19 = vpop.f32.mrf.mxu1 }
 0x26c   :  { %v739_v21 = vpop.f32.mrf.mxu1 }
 0x26d   :  { %v632_v11 = vpop.f32.mrf.mxu0 }
 0x26e   :  { %v732_v32 = vadd.f32 %v731_v15, %v632_v11  ;;  %v3369_v11 = vld [vmem:[%s3838_s8] sm:$0xff]  ;;  %v1128_v15 = vlaneseq }
 0x26f   :  { %v634_v12 = vpop.f32.mrf.mxu0  ;;  %v743_v24 = vpop.f32.mrf.mxu1 }
 0x270   :  { %v734_v35 = vadd.f32 %v733_v17, %v634_v12 }
 0x271   :  { %v638_v13 = vpop.f32.mrf.mxu0  ;;  %v745_v28 = vpop.f32.mrf.mxu1 }
 0x272   :  { %v738_v30 = vadd.f32 %v737_v19, %v638_v13 }
 0x273   :  { %v640_v14 = vpop.f32.mrf.mxu0  ;;  %v749_v37 = vpop.f32.mrf.mxu1 }
 0x274   :  { %v740_v31 = vadd.f32 %v739_v21, %v640_v14 }
 0x275   :  { %v644_v16 = vpop.f32.mrf.mxu0  ;;  %v751_v47 = vpop.f32.mrf.mxu1 }
 0x276   :  { %v744_v36 = vadd.f32 %v743_v24, %v644_v16  ;;  %v1129_v16 = vshrl.u32 %v1128_v15, 7 }
 0x277   :  { %v646_v18 = vpop.f32.mrf.mxu0 }
 0x278   :  { %v746_v41 = vadd.f32 %v745_v28, %v646_v18  ;;  %v3378_v17 = vsub.s32 0, %v1129_v16 }
 0x279   :  { %v650_v20 = vpop.f32.mrf.mxu0 }
 0x27a   :  { %v750_v46 = vadd.f32 %v749_v37, %v650_v20 }
 0x27b   :  { %v652_v22 = vpop.f32.mrf.mxu0 }
 0x27c   :  { %v752_v50 = vadd.f32 %v751_v47, %v652_v22 }
 0x291   :  { %v906_v25 = vpop.f32.mrf.mxu0 }
 0x292   :  { %v3337_v42 = vadd.f32 %v906_v25, %v732_v32 }
 0x293   :  { %v908_v27 = vpop.f32.mrf.mxu0 }
 0x294   :  { %v3339_v43 = vadd.f32 %v908_v27, %v734_v35 }
 0x295   :  { %v912_v29 = vpop.f32.mrf.mxu0 }
 0x296   :  { %v3333_v38 = vadd.f32 %v912_v29, %v738_v30  ;;  %v946_v26 = vsel %vm270_vm2, %v3339_v43, 0.0 }
 0x297   :  { %v914_v34 = vpop.f32.mrf.mxu0 }
 0x298   :  { %v3335_v39 = vadd.f32 %v914_v34, %v740_v31  ;;  %v937_v23 = vadd.f32 %v3333_v38, %v3337_v42 }
 0x299   :  { %v918_v40 = vpop.f32.mrf.mxu0 }
 0x29a   :  { %v3341_v44 = vadd.f32 %v918_v40, %v744_v36  ;;  %v947_v48 = vsel %vm270_vm2, %v3335_v39, 0.0 }
 0x29b   :  { %v920_v45 = vpop.f32.mrf.mxu0  ;;  %v948_v55 = vadd.f32 %v947_v48, %v946_v26 }
 0x29c   :  { %v3347_v49 = vadd.f32 %v920_v45, %v746_v41  ;;  %v938_v52 = vadd.f32 %v937_v23, %v3341_v44 }
 0x29d   :  { %v924_v51 = vpop.f32.mrf.mxu0 }
 0x29e   :  { %v949_v53 = vsel %vm270_vm2, %v3347_v49, 0.0  ;;  %v3354_v54 = vadd.f32 %v924_v51, %v750_v46 }
 0x29f   :  { %v926_v56 = vpop.f32.mrf.mxu0  ;;  %v950_v58 = vadd.f32 %v949_v53, %v948_v55 }
 0x2a0   :  { %v939_v33 = vadd.f32 %v938_v52, %v3354_v54  ;;  %v3357_v57 = vadd.f32 %v926_v56, %v752_v50 }
 0x2a2   :  { %v940_v59 = vrot.slane %v939_v33, 4  ;;  %v951_v60 = vsel %vm270_vm2, %v3357_v57, 0.0 }
 0x2a3   :  { %v952_v61 = vadd.f32 %v951_v60, %v950_v58 }
 0x2a4   :  { %v941_v62 = vadd.f32 %v940_v59, %v939_v33 }
 0x2a5   :  { %v953_v63 = vrot.slane %v952_v61, 4 }
 0x2a6   :  { %v942_v0 = vrot.slane %v941_v62, 2 }
 0x2a7   :  { %v954_v1 = vadd.f32 %v953_v63, %v952_v61 }
 0x2a8   :  { %v943_v2 = vadd.f32 %v942_v0, %v941_v62 }
 0x2a9   :  { %v955_v4 = vrot.slane %v954_v1, 2 }
 0x2aa   :  { %v944_v6 = vrot.slane %v943_v2, 1 }
 0x2ab   :  { %v956_v5 = vadd.f32 %v955_v4, %v954_v1 }
 0x2ac   :  { %v945_v9 = vadd.f32 %v944_v6, %v943_v2  ;;  %v1509_v6 = vld [vmem:[%s3839_s6 + $0x70] sm:$0xff] }
 0x2ad   :  { %v957_v7 = vrot.slane %v956_v5, 1 }
 0x2af   :  { %v958_v8 = vadd.f32 %v957_v7, %v956_v5  ;;  %v1510_v5 = vld [vmem:[%s3839_s6 + $0x78] sm:$0xff]  ;;  %v1508_v7 = vld [vmem:[%s3839_s6 + $0x68] sm:$0xff] }
 0x2b1   :  { %2457 = vmatprep.mubr.msk.f32.mxu1 %vm270_vm2, %v958_v8  ;;  %v1507_v8 = vld [vmem:[%s3839_s6 + $0x60] sm:$0xff] }
 0x2b2   :  { %1045 = vmatmul.mubr.f32.vlgmr.msra.gmra.mxu1 %v945_v9  ;;  %v1506_v9 = vld [vmem:[%s3839_s6 + $0x58] sm:$0xff] }
 0x2b3   :  { %1121 = vmatprep.mubr.f32.mxu1 %v2644_v3  ;;  %1088 = vmatpush1.msra.mxu1 %v3369_v11 }
 0x2b4   :  { %1288 = vmatprep.subr.mxu1 %v1052_v10 }
 0x372   :  { %v1046_v12 = vpop.f32.mrf.mxu1 }
 0x373   :  { %v3372_v13 = vmul.f32 0.001953125, %v1046_v12 }
 0x374   :  { %v1048_v14 = vpop.f32.mrf.mxu1 }
 0x375   :  { %2458 = vmatmul.mubr.msk.f32.vlgmr.msra.gmra.mxu1 %vm1053_vm9, %v3372_v13 }
 0x376   :  { %1289 = vmatpush1.msra.mxu1 %v3369_v11  ;;  %1322 = vmatprep.mubr.f32.mxu1 %v2644_v3 }
 0x377   :  { %1362 = vmatprep.subr.mxu1 %v1052_v10  ;;  %v1505_v10 = vld [vmem:[%s3839_s6 + $0x50] sm:$0xff] }
 0x435   :  { %v1123_v18 = vpop.f32.mrf.mxu1 }
 0x436   :  { %v1131_v19 = vrot.slane %v1123_v18, %v3378_v17  ;;  %v1248_v18 = vld [vmem:[%s3840_s11] sm:$0x1] }
 0x437   :  { %v1125_v20 = vpop.f32.mrf.mxu1 }
 0x438   :  { %v1136_v21 = vsub.f32 %v3337_v42, %v1131_v19  ;;  %v1138_v22 = vsub.f32 %v3333_v38, %v1131_v19  ;;  %v1140_v24 = vsub.f32 %v3341_v44, %v1131_v19  ;;  %v1135_v25 = vrot.slane %v1125_v20, %v3378_v17 }
 0x439   :  { %v1142_v27 = vsub.f32 %v3354_v54, %v1131_v19 }
 0x43a   :  { %v1144_v28 = vmul.f32 %v1136_v21, %v1136_v21  ;;  %v1146_v29 = vmul.f32 %v1138_v22, %v1138_v22  ;;  %v1137_v30 = vsub.f32 %v3339_v43, %v1135_v25  ;;  %v1139_v31 = vsub.f32 %v3335_v39, %v1135_v25  ;;  %v1252_v21 = vld [vmem:[%s3841_s12] sm:$0x1] }
 0x43b   :  { %v1141_v32 = vsub.f32 %v3347_v49, %v1135_v25  ;;  %v1143_v34 = vsub.f32 %v3357_v57, %v1135_v25  ;;  %v1148_v35 = vmul.f32 %v1140_v24, %v1140_v24  ;;  %v1150_v45 = vmul.f32 %v1142_v27, %v1142_v27  ;;  %v2477_v25 = vld [vmem:[%s3839_s6 + $0x108] sm:$0xff]  ;;  %v2476_v27 = vld [vmem:[%s3839_s6 + $0x100] sm:$0xff] }
 0x43c   :  { %v1152_v36 = vadd.f32 %v1146_v29, %v1144_v28  ;;  %v1145_v37 = vmul.f32 %v1137_v30, %v1137_v30  ;;  %v1147_v40 = vmul.f32 %v1139_v31, %v1139_v31  ;;  %v2473_v28 = vld [vmem:[%s3839_s6 + $0xe8] sm:$0xff]  ;;  %v2472_v30 = vld [vmem:[%s3839_s6 + $0xe0] sm:$0xff] }
 0x43d   :  { %v1149_v41 = vmul.f32 %v1141_v32, %v1141_v32  ;;  %v1151_v47 = vmul.f32 %v1143_v34, %v1143_v34  ;;  %v1504_v29 = vld [vmem:[%s3839_s6 + $0x48] sm:$0xff]  ;;  %v1503_v31 = vld [vmem:[%s3839_s6 + $0x40] sm:$0xff]  ;;  %v2471_v32 = vld [vmem:[%s3839_s6 + $0xd8] sm:$0xff] }
 0x43e   :  { %v1153_v46 = vadd.f32 %v1152_v36, %v1148_v35  ;;  %v1161_v23 = vsel %vm270_vm2, %v1145_v37, 0.0  ;;  %v1162_v48 = vsel %vm270_vm2, %v1147_v40, 0.0  ;;  %v1502_v34 = vld [vmem:[%s3839_s6 + $0x38] sm:$0xff]  ;;  %v2470_v35 = vld [vmem:[%s3839_s6 + $0xd0] sm:$0xff]  ;;  %v2469_v37 = vld [vmem:[%s3839_s6 + $0xc8] sm:$0xff] }
 0x43f   :  { %v1163_v51 = vadd.f32 %v1162_v48, %v1161_v23  ;;  %v1164_v26 = vsel %vm270_vm2, %v1149_v41, 0.0  ;;  %v1166_v55 = vsel %vm270_vm2, %v1151_v47, 0.0  ;;  %v1501_v36 = vld [vmem:[%s3839_s6 + $0x30] sm:$0xff]  ;;  %v1500_v40 = vld [vmem:[%s3839_s6 + $0x28] sm:$0xff]  ;;  %v2468_v41 = vld [vmem:[%s3839_s6 + $0xc0] sm:$0xff] }
 0x440   :  { %v1154_v50 = vadd.f32 %v1153_v46, %v1150_v45  ;;  %v1499_v45 = vld [vmem:[%s3839_s6 + $0x20] sm:$0xff]  ;;  %v2467_v46 = vld [vmem:[%s3839_s6 + $0xb8] sm:$0xff]  ;;  %v2466_v23 = vld [vmem:[%s3839_s6 + $0xb0] sm:$0xff] }
 0x441   :  { %v1165_v53 = vadd.f32 %v1164_v26, %v1163_v51  ;;  %v1498_v47 = vld [vmem:[%s3839_s6 + $0x18] sm:$0xff]  ;;  %v1497_v48 = vld [vmem:[%s3839_s6 + $0x10] sm:$0xff]  ;;  %v1496_v51 = vld [vmem:[%s3839_s6 + $0x8] sm:$0xff] }
 0x442   :  { %v1155_v52 = vrot.slane %v1154_v50, 4  ;;  %v2464_v26 = vld [vmem:[%s3839_s6 + $0xa0] sm:$0xff] }
 0x443   :  { %v1167_v33 = vadd.f32 %v1166_v55, %v1165_v53  ;;  %v2463_v53 = vld [vmem:[%s3839_s6 + $0x98] sm:$0xff]  ;;  %v1512_v55 = vld [vmem:[%s3839_s6 + $0x88] sm:$0xff] }
 0x444   :  { %v1156_v56 = vadd.f32 %v1155_v52, %v1154_v50  ;;  %v2465_v50 = vld [vmem:[%s3839_s6 + $0xa8] sm:$0xff]  ;;  %v1495_v52 = vld [vmem:[%s3839_s6] sm:$0xff] }
 0x445   :  { %v1168_v59 = vrot.slane %v1167_v33, 4 }
 0x446   :  { %v1157_v58 = vrot.slane %v1156_v56, 2 }
 0x447   :  { %v1169_v60 = vadd.f32 %v1168_v59, %v1167_v33  ;;  %v1511_v33 = vld [vmem:[%s3839_s6 + $0x80] sm:$0xff]  ;;  %v2478_v59 = vld [vmem:[%s3839_s6 + $0x110] sm:$0xff] }
 0x448   :  { %v1158_v61 = vadd.f32 %v1157_v58, %v1156_v56  ;;  %v2462_v56 = vld [vmem:[%s3839_s6 + $0x90] sm:$0xff]  ;;  %v2479_v58 = vld [vmem:[%s3839_s6 + $0x118] sm:$0xff] }
 0x449   :  { %v1170_v62 = vrot.slane %v1169_v60, 2 }
 0x44a   :  { %v1159_v0 = vrot.slane %v1158_v61, 1 }
 0x44b   :  { %v1171_v63 = vadd.f32 %v1170_v62, %v1169_v60 }
 0x44c   :  { %v1160_v4 = vadd.f32 %v1159_v0, %v1158_v61 }
 0x44d   :  { %v1172_v1 = vrot.slane %v1171_v63, 1 }
 0x44f   :  { %v1173_v2 = vadd.f32 %v1172_v1, %v1171_v63 }
 0x451   :  { %2459 = vmatprep.mubr.msk.f32.mxu0 %vm270_vm2, %v1173_v2 }
 0x452   :  { %1242 = vmatmul.mubr.f32.vlgmr.msra.gmra.mxu0 %v1160_v4 }
 0x453   :  { %1680 = vmatpush1.msra.mxu0 %v1510_v5 }
 0x454   :  { %1681 = vmatprep.subr.mxu0 %v2644_v3 }
 0x455   :  { %1682 = vmatpush1.msra.mxu0 %v1509_v6 }
 0x456   :  { %1683 = vmatprep.subr.mxu0 %v2644_v3 }
 0x457   :  { %1684 = vmatpush1.msra.mxu0 %v1508_v7 }
 0x458   :  { %1685 = vmatprep.subr.mxu0 %v2644_v3 }
 0x459   :  { %1686 = vmatpush1.msra.mxu0 %v1507_v8 }
 0x45a   :  { %1687 = vmatprep.subr.mxu0 %v2644_v3 }
 0x45b   :  { %1688 = vmatpush1.msra.mxu0 %v1506_v9 }
 0x45c   :  { %1689 = vmatprep.subr.mxu0 %v2644_v3 }
 0x45d   :  { %1690 = vmatpush1.msra.mxu0 %v1505_v10 }
 0x45e   :  { %1691 = vmatprep.subr.mxu0 %v2644_v3 }
 0x45f   :  { %1692 = vmatpush1.msra.mxu0 %v1504_v29 }
 0x460   :  { %1693 = vmatprep.subr.mxu0 %v2644_v3 }
 0x461   :  { %1694 = vmatpush1.msra.mxu0 %v1503_v31 }
 0x462   :  { %1695 = vmatprep.subr.mxu0 %v2644_v3 }
 0x463   :  { %1696 = vmatpush1.msra.mxu0 %v1502_v34 }
 0x464   :  { %1697 = vmatprep.subr.mxu0 %v2644_v3 }
 0x465   :  { %1698 = vmatpush1.msra.mxu0 %v1501_v36 }
 0x466   :  { %1699 = vmatprep.subr.mxu0 %v2644_v3 }
 0x467   :  { %1700 = vmatpush1.msra.mxu0 %v1500_v40 }
 0x468   :  { %1701 = vmatprep.subr.mxu0 %v2644_v3 }
 0x469   :  { %1702 = vmatpush1.msra.mxu0 %v1499_v45 }
 0x46a   :  { %1703 = vmatprep.subr.mxu0 %v2644_v3 }
 0x46b   :  { %1704 = vmatpush1.msra.mxu0 %v1498_v47 }
 0x46c   :  { %1705 = vmatprep.subr.mxu0 %v2644_v3 }
 0x46d   :  { %1706 = vmatpush1.msra.mxu0 %v1497_v48 }
 0x46e   :  { %1707 = vmatprep.subr.mxu0 %v2644_v3 }
 0x46f   :  { %1708 = vmatpush1.msra.mxu0 %v1496_v51 }
 0x470   :  { %1709 = vmatprep.subr.mxu0 %v2644_v3 }
 0x471   :  { %1710 = vmatpush1.msra.mxu0 %v1495_v52 }
 0x472   :  { %1739 = vmatprep.subr.mxu0 %v2644_v3 }
 0x473   :  { %1740 = vmatpush2.msra.mxu0 %v1512_v55  ;;  %v2503_v55 = vld [vmem:[%s3839_s6 + $0x198] sm:$0xff] }
 0x474   :  { %1741 = vmatprep.subr.mxu0 %v2644_v3 }
 0x475   :  { %1742 = vmatpush2.msra.mxu0 %v1511_v33 }
 0x476   :  { %2553 = vmatprep.subr.mxu0 %v2644_v3 }
 0x512   :  { %v1243_v12 = vpop.f32.mrf.mxu0 }
 0x513   :  { %v1247_v14 = vmul.f32 0.001953125, %v1243_v12 }
 0x514   :  { %v1245_v15 = vpop.f32.mrf.mxu0 }
 0x515   :  { %v1249_v16 = vadd.f32 1e-05, %v1247_v14 }
 0x517   :  { %2640 = vrsqrt.f32 %v1249_v16 }
 0x524   :  { %v2641_v19 = vpop.eup %2640 }
 0x525   :  { %v1251_v20 = vmul.f32 %v2641_v19, %v1248_v18 }
 0x527   :  { %2460 = vmatmul.mubr.msk.f32.vlgmr.msra.gmra.mxu1 %vm1053_vm9, %v1251_v20  ;;  %v1253_v22 = vmul.f32 %v1251_v20, %v3372_v13  ;;  %v2474_v13 = vld [vmem:[%s3839_s6 + $0xf0] sm:$0xff] }
 0x528   :  { %1363 = vmatpush1.msra.mxu1 %v3369_v11  ;;  %1396 = vmatprep.mubr.f32.mxu1 %v2644_v3  ;;  %v2475_v11 = vld [vmem:[%s3839_s6 + $0xf8] sm:$0xff] }
 0x529   :  { %v1254_v24 = vsub.f32 %v1252_v21, %v1253_v22  ;;  %1584 = vmatprep.subr.mxu1 %v2644_v3 }
 0x52b   :  { %2461 = vmatmul.mubr.msk.f32.vlgmr.msra.gmra.mxu1 %vm1053_vm9, %v1254_v24 }
 0x52c   :  { %1585 = vmatpush1.msra.mxu1 %v2477_v25 }
 0x52d   :  { %1586 = vmatprep.subr.mxu1 %v2644_v3 }
 0x52e   :  { %1587 = vmatpush1.msra.mxu1 %v2476_v27 }
 0x52f   :  { %1588 = vmatprep.subr.mxu1 %v2644_v3 }
 0x530   :  { %1589 = vmatpush1.msra.mxu1 %v2475_v11 }
 0x531   :  { %1590 = vmatprep.subr.mxu1 %v2644_v3 }
 0x532   :  { %1591 = vmatpush1.msra.mxu1 %v2474_v13 }
 0x533   :  { %1592 = vmatprep.subr.mxu1 %v2644_v3 }
 0x534   :  { %1593 = vmatpush1.msra.mxu1 %v2473_v28 }
 0x535   :  { %1594 = vmatprep.subr.mxu1 %v2644_v3 }
 0x536   :  { %1595 = vmatpush1.msra.mxu1 %v2472_v30 }
 0x537   :  { %1596 = vmatprep.subr.mxu1 %v2644_v3 }
 0x538   :  { %1597 = vmatpush1.msra.mxu1 %v2471_v32 }
 0x539   :  { %1598 = vmatprep.subr.mxu1 %v2644_v3 }
 0x53a   :  { %1599 = vmatpush1.msra.mxu1 %v2470_v35 }
 0x53b   :  { %1600 = vmatprep.subr.mxu1 %v2644_v3 }
 0x53c   :  { %1601 = vmatpush1.msra.mxu1 %v2469_v37 }
 0x53d   :  { %1602 = vmatprep.subr.mxu1 %v2644_v3 }
 0x53e   :  { %1603 = vmatpush1.msra.mxu1 %v2468_v41 }
 0x53f   :  { %1604 = vmatprep.subr.mxu1 %v2644_v3 }
 0x540   :  { %1605 = vmatpush1.msra.mxu1 %v2467_v46 }
 0x541   :  { %1606 = vmatprep.subr.mxu1 %v2644_v3 }
 0x542   :  { %1607 = vmatpush1.msra.mxu1 %v2466_v23 }
 0x543   :  { %1608 = vmatprep.subr.mxu1 %v2644_v3 }
 0x544   :  { %1609 = vmatpush1.msra.mxu1 %v2465_v50 }
 0x545   :  { %1610 = vmatprep.subr.mxu1 %v2644_v3 }
 0x546   :  { %1611 = vmatpush1.msra.mxu1 %v2464_v26 }
 0x547   :  { %1612 = vmatprep.subr.mxu1 %v2644_v3 }
 0x548   :  { %1613 = vmatpush1.msra.mxu1 %v2463_v53 }
 0x549   :  { %1614 = vmatprep.subr.mxu1 %v2644_v3 }
 0x54a   :  { %1615 = vmatpush1.msra.mxu1 %v2462_v56 }
 0x54b   :  { %1644 = vmatprep.subr.mxu1 %v2644_v3 }
 0x54c   :  { %1645 = vmatpush2.msra.mxu1 %v2479_v58 }
 0x54d   :  { %1646 = vmatprep.subr.mxu1 %v2644_v3 }
 0x54e   :  { %1647 = vmatpush2.msra.mxu1 %v2478_v59 }
 0x54f   :  { %1831 = vmatprep.subr.mxu1 %v2644_v3 }
 0x5e7   :  { %v1324_v60 = vpop.f32.mrf.mxu1 }
 0x5e8   :  { %v1406_v61 = vrot.slane %v1324_v60, %v3378_v17 }
 0x5e9   :  { %v1326_v62 = vpop.f32.mrf.mxu1 }
 0x5ea   :  { %v1411_v63 = vmul.f32 %v1406_v61, %v3337_v42  ;;  %v1410_v0 = vrot.slane %v1326_v62, %v3378_v17  ;;  %v1413_v2 = vmul.f32 %v1406_v61, %v3333_v38  ;;  %v1415_v4 = vmul.f32 %v1406_v61, %v3341_v44 }
 0x5eb   :  { %v1398_v1 = vpop.f32.mrf.mxu1  ;;  %v1417_v5 = vmul.f32 %v1406_v61, %v3354_v54  ;;  %v2502_v61 = vld [vmem:[%s3839_s6 + $0x190] sm:$0xff] }
 0x5ec   :  { %v1422_v6 = vrot.slane %v1398_v1, %v3378_v17  ;;  %v1412_v7 = vmul.f32 %v1410_v0, %v3339_v43  ;;  %v1414_v42 = vmul.f32 %v1410_v0, %v3335_v39  ;;  %v1416_v15 = vmul.f32 %v1410_v0, %v3347_v49 }
 0x5ed   :  { %v1400_v8 = vpop.f32.mrf.mxu1  ;;  %v1418_v16 = vmul.f32 %v1410_v0, %v3357_v57 }
 0x5ee   :  { %v1427_v9 = vadd.f32 %v1422_v6, %v1411_v63  ;;  %v1429_v10 = vadd.f32 %v1422_v6, %v1413_v2  ;;  %v1431_v12 = vadd.f32 %v1422_v6, %v1415_v4  ;;  %v1433_v14 = vadd.f32 %v1422_v6, %v1417_v5  ;;  %v2501_v2 = vld [vmem:[%s3839_s6 + $0x188] sm:$0xff] }
 0x5ef   :  { %v1426_v38 = vrot.slane %v1400_v8, %v3378_v17 }
 0x5f0   :  { %v1435_v44 = vmax.f32 %v1427_v9, 0.0  ;;  %v1437_v18 = vmax.f32 %v1429_v10, 0.0  ;;  %v1439_v54 = vmax.f32 %v1431_v12, 0.0  ;;  %v1441_v19 = vmax.f32 %v1433_v14, 0.0  ;;  %v2500_v9 = vld [vmem:[%s3839_s6 + $0x180] sm:$0xff] }
 0x5f1   :  { %v1428_v20 = vadd.f32 %v1426_v38, %v1412_v7  ;;  %v1430_v21 = vadd.f32 %v1426_v38, %v1414_v42  ;;  %v1432_v43 = vadd.f32 %v1426_v38, %v1416_v15  ;;  %v1434_v22 = vadd.f32 %v1426_v38, %v1418_v16  ;;  %v2499_v15 = vld [vmem:[%s3839_s6 + $0x178] sm:$0xff] }
 0x5f2   :  { %v1451_v24 = vrot.slane %v1435_v44, 7  ;;  %v1453_v25 = vrot.slane %v1437_v18, 7  ;;  %v1457_v27 = vrot.slane %v1439_v54, 7  ;;  %v1459_v11 = vrot.slane %v1441_v19, 7  ;;  %v2498_v18 = vld [vmem:[%s3839_s6 + $0x170] sm:$0xff] }
 0x5f3   :  { %v1436_v13 = vmax.f32 %v1428_v20, 0.0  ;;  %v1438_v39 = vmax.f32 %v1430_v21, 0.0  ;;  %v1440_v28 = vmax.f32 %v1432_v43, 0.0  ;;  %v1442_v49 = vmax.f32 %v1434_v22, 0.0  ;;  %v2497_v20 = vld [vmem:[%s3839_s6 + $0x168] sm:$0xff]  ;;  %v2496_v22 = vld [vmem:[%s3839_s6 + $0x160] sm:$0xff] }
 0x5f4   :  { %v3564_v57 = vsel %vm393_vm6, %v1451_v24, %v1453_v25  ;;  %v3567_v29 = vsel %vm393_vm6, %v1457_v27, %v1459_v11  ;;  %1475 = vst [vmem:[#allocation2] sm:$0xfe] %v1451_v24  ;;  %1479 = vst [vmem:[#allocation2 + $0x20] sm:$0x1] %v1453_v25  ;;  %v2495_v24 = vld [vmem:[%s3839_s6 + $0x158] sm:$0xff]  ;;  %v2494_v25 = vld [vmem:[%s3839_s6 + $0x150] sm:$0xff] }
 0x5f5   :  { %1481 = vst [vmem:[#allocation2 + $0x30] sm:$0xfe] %v1457_v27  ;;  %1485 = vst [vmem:[#allocation2 + $0x50] sm:$0x1] %v1459_v11  ;;  %v1452_v30 = vrot.slane %v1436_v13, 7  ;;  %v1455_v31 = vrot.slane %v1438_v39, 7 }
 0x5f6   :  { %v1458_v32 = vrot.slane %v1440_v28, 7  ;;  %v1461_v34 = vrot.slane %v1442_v49, 7  ;;  %v1534_v52 = vrot.slane %v3564_v57, 1  ;;  %v1544_v12 = vrot.slane %v3567_v29, 1  ;;  %v2493_v27 = vld [vmem:[%s3839_s6 + $0x148] sm:$0xff]  ;;  %v2492_v11 = vld [vmem:[%s3839_s6 + $0x140] sm:$0xff] }
 0x5f7   :  { %v1456_v35 = vsel %vm393_vm6, %v1452_v30, %v1455_v31  ;;  %1476 = vst.msk [vmem:[#allocation2 + $0x8] sm:$0xfe] %vm419_vm4, %v1452_v30  ;;  %v2491_v13 = vld [vmem:[%s3839_s6 + $0x138] sm:$0xff]  ;;  %v2490_v39 = vld [vmem:[%s3839_s6 + $0x130] sm:$0xff]  ;;  %v2489_v28 = vld [vmem:[%s3839_s6 + $0x128] sm:$0xff] }
 0x5f8   :  { %v1462_v36 = vsel %vm393_vm6, %v1458_v32, %v1461_v34  ;;  %1480 = vst.msk [vmem:[#allocation2 + $0x28] sm:$0x1] %vm424_vm5, %v1455_v31  ;;  %1486 = vst.msk [vmem:[#allocation2 + $0x58] sm:$0x1] %vm424_vm5, %v1461_v34  ;;  %v2488_v49 = vld [vmem:[%s3839_s6 + $0x120] sm:$0xff] }
 0x5f9   :  { %1482 = vst.msk [vmem:[#allocation2 + $0x38] sm:$0xfe] %vm419_vm4, %v1458_v32  ;;  %v2505_v32 = vld [vmem:[%s3839_s6 + $0x1a8] sm:$0xff] }
 0x5fa   :  { %1478 = vst.msk [vmem:[#allocation2 + $0x18] sm:$0xff] %vm270_vm2, %v1456_v35  ;;  %1484 = vst.msk [vmem:[#allocation2 + $0x48] sm:$0xff] %vm270_vm2, %v1462_v36  ;;  %v2504_v35 = vld [vmem:[%s3839_s6 + $0x1a0] sm:$0xff] }
 0x5fb   :  { %v1513_v37 = vld [vmem:[#allocation2] sm:$0xfe]  ;;  %v1515_v26 = vld [vmem:[#allocation2 + $0x20] sm:$0x1] }
 0x5fc   :  { %v1487_v46 = vld [vmem:[#allocation2] sm:$0xff]  ;;  %v1533_v48 = vrot.slane %v1513_v37, 1  ;;  %v1539_v59 = vrot.slane %v1515_v26, 1  ;;  %v1517_v1 = vld [vmem:[#allocation2 + $0x30] sm:$0xfe] }
 0x5fd   :  { %v1491_v6 = vld [vmem:[#allocation2 + $0x30] sm:$0xff]  ;;  %v1543_v7 = vrot.slane %v1517_v1, 1  ;;  %v1764_v30 = vld [vmem:[#allocation2] sm:$0xfc]  ;;  %v1766_v37 = vld [vmem:[#allocation2 + $0x20] sm:$0x3] }
 0x5fe   :  { %v1488_v40 = vld [vmem:[#allocation2 + $0x8] sm:$0xff]  ;;  %v1535_v58 = vsel %vm496_vm7, %v1533_v48, %v1534_v52  ;;  %v1540_v4 = vsel %vm496_vm7, %v1534_v52, %v1539_v59  ;;  %v1519_v10 = vld [vmem:[#allocation2 + $0x50] sm:$0x1]  ;;  %v1780_v34 = vrot.slane %v1764_v30, 2 }
 0x5ff   :  { %v1514_v41 = vld [vmem:[#allocation2 + $0x8] sm:$0xfe]  ;;  %v1516_v45 = vld [vmem:[#allocation2 + $0x28] sm:$0x1]  ;;  %2484 = vmatprep.mubr.msk.f32.mxu0 %vm270_vm2, %v1488_v40  ;;  %v1520_v5 = vld [vmem:[#allocation2 + $0x58] sm:$0x1]  ;;  %v1545_v16 = vsel %vm496_vm7, %v1543_v7, %v1544_v12 }
 0x600   :  { %v1536_v23 = vrot.slane %v1514_v41, 1  ;;  %1744 = vmatmul.mubr.f32.vlgmr.msra.gmra.mxu0 %v1487_v46  ;;  %v1541_v51 = vrot.slane %v1516_v45, 1  ;;  %v1518_v33 = vld [vmem:[#allocation2 + $0x38] sm:$0xfe]  ;;  %v1551_v14 = vrot.slane %v1520_v5, 1  ;;  %v1549_v38 = vrot.slane %v1519_v10, 1 }
 0x601   :  { %v3578_v47 = vld [vmem:[#allocation2 + $0x18] sm:$0xff]  ;;  %v3588_v56 = vld [vmem:[#allocation2 + $0x48] sm:$0xff]  ;;  %v1546_v63 = vrot.slane %v1518_v33, 1  ;;  %v1781_v40 = vrot.slane %v3564_v57, 2  ;;  %v1786_v46 = vrot.slane %v1766_v37, 2  ;;  %v1791_v33 = vrot.slane %v3567_v29, 2 }
 0x602   :  { %v1537_v50 = vrot.slane %v3578_v47, 1  ;;  %2485 = vmatprep.mubr.msk.f32.mxu0 %vm270_vm2, %v3578_v47  ;;  %v1492_v62 = vld [vmem:[#allocation2 + $0x38] sm:$0xff]  ;;  %v1547_v0 = vrot.slane %v3588_v56, 1  ;;  %v1765_v42 = vld [vmem:[#allocation2 + $0x8] sm:$0xfc]  ;;  %v1784_v44 = vrot.slane %v3578_v47, 2  ;;  %v1550_v21 = vsel %vm496_vm7, %v1544_v12, %v1549_v38 }
 0x603   :  { %v1783_v54 = vrot.slane %v1765_v42, 2  ;;  %v1767_v31 = vld [vmem:[#allocation2 + $0x28] sm:$0x3]  ;;  %v1769_v41 = vld [vmem:[#allocation2 + $0x38] sm:$0xfc]  ;;  %v1782_v45 = vsel %vm770_vm8, %v1780_v34, %v1781_v40  ;;  %v1794_v48 = vrot.slane %v3588_v56, 2 }
 0x604   :  { %v1538_v53 = vsel %vm496_vm7, %v1536_v23, %v1537_v50  ;;  %1749 = vmatmul.mubr.f32.gmra.mxu0 %v3564_v57  ;;  %v1542_v60 = vsel %vm496_vm7, %v1537_v50, %v1541_v51  ;;  %v1548_v8 = vsel %vm496_vm7, %v1546_v63, %v1547_v0  ;;  %v1552_v19 = vsel %vm496_vm7, %v1547_v0, %v1551_v14  ;;  %v1768_v50 = vld [vmem:[#allocation2 + $0x30] sm:$0xfc]  ;;  %v1771_v51 = vld [vmem:[#allocation2 + $0x58] sm:$0x3]  ;;  %v1941_v63 = vld [vmem:[%s3842_s9 + $0x60] sm:$0xff] }
 0x605   :  { %2480 = vmatprep.mubr.msk.f32.mxu1 %vm270_vm2, %v1538_v53  ;;  %2486 = vmatprep.mubr.msk.f32.mxu0 %vm270_vm2, %v1492_v62  ;;  %v1785_v43 = vsel %vm770_vm8, %v1783_v54, %v1784_v44  ;;  %v1788_v36 = vrot.slane %v1767_v31, 2  ;;  %v1793_v23 = vrot.slane %v1769_v41, 2  ;;  %v1787_v57 = vsel %vm770_vm8, %v1781_v40, %v1786_v46  ;;  %v1942_v62 = vld [vmem:[%s3842_s9 + $0x68] sm:$0xff]  ;;  %v1940_v0 = vld [vmem:[%s3842_s9 + $0x58] sm:$0xff]  ;;  %v1939_v1 = vld [vmem:[%s3842_s9 + $0x50] sm:$0xff] }
 0x606   :  { %1649 = vmatmul.mubr.f32.vlgmr.msra.gmra.mxu1 %v1535_v58  ;;  %v1790_v26 = vrot.slane %v1768_v50, 2  ;;  %v1798_v53 = vrot.slane %v1771_v51, 2  ;;  %v1936_v5 = vld [vmem:[%s3842_s9 + $0x38] sm:$0xff]  ;;  %v1934_v7 = vld [vmem:[%s3842_s9 + $0x28] sm:$0xff]  ;;  %v1931_v10 = vld [vmem:[%s3842_s9 + $0x10] sm:$0xff] }
 0x607   :  { %1832 = vmatpush1.msra.mxu1 %v2503_v55  ;;  %2481 = vmatprep.mubr.msk.f32.mxu1 %vm270_vm2, %v1542_v60  ;;  %v1789_v47 = vsel %vm770_vm8, %v1784_v44, %v1788_v36  ;;  %v1795_v52 = vsel %vm770_vm8, %v1793_v23, %v1794_v48  ;;  %v1770_v55 = vld [vmem:[#allocation2 + $0x50] sm:$0x3]  ;;  %v1930_v12 = vld [vmem:[%s3842_s9 + $0x8] sm:$0xff]  ;;  %v1929_v14 = vld [vmem:[%s3842_s9] sm:$0xff] }
 0x608   :  { %1833 = vmatprep.subr.mxu1 %v2644_v3  ;;  %1754 = vmatmul.mubr.f32.gmra.mxu0 %v1491_v6  ;;  %v1796_v58 = vrot.slane %v1770_v55, 2  ;;  %v1799_v59 = vsel %vm770_vm8, %v1794_v48, %v1798_v53  ;;  %v1935_v6 = vld [vmem:[%s3842_s9 + $0x30] sm:$0xff] }
 0x609   :  { %1834 = vmatpush1.msra.mxu1 %v2502_v61  ;;  %2487 = vmatprep.mubr.msk.f32.mxu0 %vm270_vm2, %v3588_v56  ;;  %v1792_v56 = vsel %vm770_vm8, %v1790_v26, %v1791_v33  ;;  %v1944_v61 = vld [vmem:[%s3842_s9 + $0x78] sm:$0xff] }
 0x60a   :  { %1835 = vmatprep.subr.mxu1 %v2644_v3  ;;  %1654 = vmatmul.mubr.f32.gmra.mxu1 %v1540_v4  ;;  %v1797_v60 = vsel %vm770_vm8, %v1791_v33, %v1796_v58  ;;  %v1937_v4 = vld [vmem:[%s3842_s9 + $0x40] sm:$0xff] }
 0x60b   :  { %1836 = vmatpush1.msra.mxu1 %v2501_v2  ;;  %2482 = vmatprep.mubr.msk.f32.mxu1 %vm270_vm2, %v1548_v8  ;;  %v1938_v2 = vld [vmem:[%s3842_s9 + $0x48] sm:$0xff]  ;;  %v1933_v8 = vld [vmem:[%s3842_s9 + $0x20] sm:$0xff] }
 0x60c   :  { %1837 = vmatprep.subr.mxu1 %v2644_v3  ;;  %1759 = vmatmul.mubr.f32.gmra.mxu0 %v3567_v29  ;;  %v1943_v29 = vld [vmem:[%s3842_s9 + $0x70] sm:$0xff]  ;;  %v2016_v33 = vld [vmem:[%s3843_s10] sm:$0xff] }
 0x60d   :  { %1838 = vmatpush1.msra.mxu1 %v2500_v9  ;;  %2554 = vmatpush3.msra.mxu0 %v1944_v61  ;;  %v1932_v9 = vld [vmem:[%s3842_s9 + $0x18] sm:$0xff] }
 0x60e   :  { %1839 = vmatprep.subr.mxu1 %v2644_v3  ;;  %1659 = vmatmul.mubr.f32.gmra.mxu1 %v1545_v16 }
 0x60f   :  { %1840 = vmatpush1.msra.mxu1 %v2499_v15  ;;  %2483 = vmatprep.mubr.msk.f32.mxu1 %vm270_vm2, %v1552_v19 }
 0x610   :  { %1841 = vmatprep.subr.mxu1 %v2644_v3  ;;  %2555 = vmatprep.subr.mxu0 %v2644_v3 }
 0x611   :  { %1842 = vmatpush1.msra.mxu1 %v2498_v18  ;;  %2556 = vmatpush3.msra.mxu0 %v1943_v29 }
 0x612   :  { %1843 = vmatprep.subr.mxu1 %v2644_v3  ;;  %1664 = vmatmul.mubr.f32.gmra.mxu1 %v1550_v21 }
 0x613   :  { %1844 = vmatpush1.msra.mxu1 %v2497_v20  ;;  %2506 = vmatprep.mubr.msk.f32.mxu1 %vm270_vm2, %v1785_v43 }
 0x614   :  { %1845 = vmatprep.subr.mxu1 %v2644_v3  ;;  %2557 = vmatprep.subr.mxu0 %v2644_v3 }
 0x615   :  { %1846 = vmatpush1.msra.mxu1 %v2496_v22  ;;  %2558 = vmatpush3.msra.mxu0 %v1942_v62 }
 0x616   :  { %1847 = vmatprep.subr.mxu1 %v2644_v3  ;;  %2559 = vmatprep.subr.mxu0 %v2644_v3 }
 0x617   :  { %1848 = vmatpush1.msra.mxu1 %v2495_v24  ;;  %2560 = vmatpush3.msra.mxu0 %v1941_v63 }
 0x618   :  { %1849 = vmatprep.subr.mxu1 %v2644_v3  ;;  %2561 = vmatprep.subr.mxu0 %v2644_v3 }
 0x619   :  { %1850 = vmatpush1.msra.mxu1 %v2494_v25  ;;  %2562 = vmatpush3.msra.mxu0 %v1940_v0 }
 0x61a   :  { %1851 = vmatprep.subr.mxu1 %v2644_v3  ;;  %2563 = vmatprep.subr.mxu0 %v2644_v3 }
 0x61b   :  { %1852 = vmatpush1.msra.mxu1 %v2493_v27  ;;  %2564 = vmatpush3.msra.mxu0 %v1939_v1 }
 0x61c   :  { %1853 = vmatprep.subr.mxu1 %v2644_v3  ;;  %2565 = vmatprep.subr.mxu0 %v2644_v3 }
 0x61d   :  { %1854 = vmatpush1.msra.mxu1 %v2492_v11  ;;  %2566 = vmatpush3.msra.mxu0 %v1938_v2 }
 0x61e   :  { %1855 = vmatprep.subr.mxu1 %v2644_v3  ;;  %2567 = vmatprep.subr.mxu0 %v2644_v3 }
 0x61f   :  { %1856 = vmatpush1.msra.mxu1 %v2491_v13  ;;  %2568 = vmatpush3.msra.mxu0 %v1937_v4 }
 0x620   :  { %1857 = vmatprep.subr.mxu1 %v2644_v3  ;;  %2569 = vmatprep.subr.mxu0 %v2644_v3 }
 0x621   :  { %1858 = vmatpush1.msra.mxu1 %v2490_v39  ;;  %2570 = vmatpush3.msra.mxu0 %v1936_v5 }
 0x622   :  { %1859 = vmatprep.subr.mxu1 %v2644_v3  ;;  %2571 = vmatprep.subr.mxu0 %v2644_v3 }
 0x623   :  { %1860 = vmatpush1.msra.mxu1 %v2489_v28  ;;  %2572 = vmatpush3.msra.mxu0 %v1935_v6 }
 0x624   :  { %1861 = vmatprep.subr.mxu1 %v2644_v3  ;;  %2573 = vmatprep.subr.mxu0 %v2644_v3 }
 0x625   :  { %1862 = vmatpush1.msra.mxu1 %v2488_v49  ;;  %2574 = vmatpush3.msra.mxu0 %v1934_v7 }
 0x626   :  { %1891 = vmatprep.subr.mxu1 %v2644_v3  ;;  %2575 = vmatprep.subr.mxu0 %v2644_v3 }
 0x627   :  { %1892 = vmatpush2.msra.mxu1 %v2505_v32  ;;  %2576 = vmatpush3.msra.mxu0 %v1933_v8 }
 0x628   :  { %1893 = vmatprep.subr.mxu1 %v2644_v3  ;;  %2577 = vmatprep.subr.mxu0 %v2644_v3 }
 0x629   :  { %1894 = vmatpush2.msra.mxu1 %v2504_v35  ;;  %2578 = vmatpush3.msra.mxu0 %v1932_v9 }
 0x62a   :  { %1896 = vmatmul.mubr.f32.vlgmr.msra.gmra.mxu1 %v1782_v45  ;;  %2593 = vmatprep.subr.mxu1 %v2644_v3 }
 0x62b   :  { %2507 = vmatprep.mubr.msk.f32.mxu1 %vm270_vm2, %v1789_v47  ;;  %2594 = vmatpush3.msra.mxu1 %v1944_v61 }
 0x62c   :  { %2595 = vmatprep.subr.mxu1 %v2644_v3  ;;  %2585 = vmatprep.mubr.msk.f32.mxu0 %vm2645_vm10, %v2644_v3 }
 0x62d   :  { %2596 = vmatpush3.msra.mxu1 %v1943_v29  ;;  %2579 = vmatprep.subr.mxu0 %v2644_v3 }
 0x62e   :  { %1901 = vmatmul.mubr.f32.gmra.mxu1 %v1787_v57  ;;  %2597 = vmatprep.subr.mxu1 %v2644_v3 }
 0x62f   :  { %2508 = vmatprep.mubr.msk.f32.mxu1 %vm270_vm2, %v1795_v52  ;;  %2598 = vmatpush3.msra.mxu1 %v1942_v62 }
 0x630   :  { %2599 = vmatprep.subr.mxu1 %v2644_v3  ;;  %2580 = vmatpush3.msra.mxu0 %v1931_v10 }
 0x631   :  { %2600 = vmatpush3.msra.mxu1 %v1941_v63  ;;  %2581 = vmatprep.subr.mxu0 %v2644_v3 }
 0x632   :  { %1906 = vmatmul.mubr.f32.gmra.mxu1 %v1792_v56  ;;  %2601 = vmatprep.subr.mxu1 %v2644_v3 }
 0x633   :  { %2509 = vmatprep.mubr.msk.f32.mxu1 %vm270_vm2, %v1799_v59  ;;  %2602 = vmatpush3.msra.mxu1 %v1940_v0 }
 0x634   :  { %2603 = vmatprep.subr.mxu1 %v2644_v3  ;;  %2582 = vmatpush3.msra.mxu0 %v1930_v12 }
 0x635   :  { %2604 = vmatpush3.msra.mxu1 %v1939_v1  ;;  %2583 = vmatprep.subr.mxu0 %v2644_v3 }
 0x636   :  { %1911 = vmatmul.mubr.f32.gmra.mxu1 %v1797_v60  ;;  %2605 = vmatprep.subr.mxu1 %v2644_v3 }
 0x637   :  { %2606 = vmatpush3.msra.mxu1 %v1938_v2  ;;  %2584 = vmatpush3.msra.mxu0 %v1929_v14 }
 0x638   :  { %2607 = vmatprep.subr.mxu1 %v2644_v3  ;;  %2588 = vmatprep.subr.mxu0 %v2644_v3 }
 0x639   :  { %2608 = vmatpush3.msra.mxu1 %v1937_v4  ;;  %2625 = vmatprep.mubr.msk.f32.mxu1 %vm2645_vm10, %v2644_v3 }
 0x63a   :  { %2609 = vmatprep.subr.mxu1 %v2644_v3 }
 0x63b   :  { %2610 = vmatpush3.msra.mxu1 %v1936_v5 }
 0x63c   :  { %2611 = vmatprep.subr.mxu1 %v2644_v3 }
 0x63d   :  { %2612 = vmatpush3.msra.mxu1 %v1935_v6 }
 0x63e   :  { %2613 = vmatprep.subr.mxu1 %v2644_v3 }
 0x63f   :  { %2614 = vmatpush3.msra.mxu1 %v1934_v7 }
 0x640   :  { %2615 = vmatprep.subr.mxu1 %v2644_v3 }
 0x641   :  { %2616 = vmatpush3.msra.mxu1 %v1933_v8 }
 0x642   :  { %2617 = vmatprep.subr.mxu1 %v2644_v3 }
 0x643   :  { %2618 = vmatpush3.msra.mxu1 %v1932_v9 }
 0x644   :  { %2619 = vmatprep.subr.mxu1 %v2644_v3 }
 0x645   :  { %2620 = vmatpush3.msra.mxu1 %v1931_v10 }
 0x646   :  { %2621 = vmatprep.subr.mxu1 %v2644_v3 }
 0x647   :  { %2622 = vmatpush3.msra.mxu1 %v1930_v12 }
 0x648   :  { %2623 = vmatprep.subr.mxu1 %v2644_v3 }
 0x649   :  { %2624 = vmatpush3.msra.mxu1 %v1929_v14 }
 0x6c0   :  { %v1745_v42 = vpop.f32.mrf.mxu0 }
 0x6c2   :  { %v1747_v15 = vpop.f32.mrf.mxu0 }
 0x6c4   :  { %v1750_v38 = vpop.f32.mrf.mxu0 }
 0x6c6   :  { %v1650_v16 = vpop.f32.mrf.mxu1  ;;  %v1752_v18 = vpop.f32.mrf.mxu0 }
 0x6c7   :  { %v1746_v31 = vadd.f32 %v1745_v42, %v1650_v16 }
 0x6c8   :  { %v1652_v44 = vpop.f32.mrf.mxu1  ;;  %v1755_v19 = vpop.f32.mrf.mxu0 }
 0x6ca   :  { %v1655_v54 = vpop.f32.mrf.mxu1  ;;  %v1757_v21 = vpop.f32.mrf.mxu0 }
 0x6cb   :  { %v1751_v49 = vadd.f32 %v1750_v38, %v1655_v54 }
 0x6cc   :  { %v1657_v20 = vpop.f32.mrf.mxu1  ;;  %v1760_v22 = vpop.f32.mrf.mxu0 }
 0x6ce   :  { %v1660_v43 = vpop.f32.mrf.mxu1  ;;  %v1762_v25 = vpop.f32.mrf.mxu0 }
 0x6cf   :  { %v1756_v32 = vadd.f32 %v1755_v19, %v1660_v43  ;;  %v2182_v19 = vld [vmem:[%s3844_s13] sm:$0x1] }
 0x6d0   :  { %v1662_v24 = vpop.f32.mrf.mxu1  ;;  %v2186_v43 = vld [vmem:[%s3845_s14] sm:$0x1] }
 0x6d2   :  { %v1665_v27 = vpop.f32.mrf.mxu1 }
 0x6d3   :  { %v1761_v41 = vadd.f32 %v1760_v22, %v1665_v27 }
 0x6d4   :  { %v1667_v11 = vpop.f32.mrf.mxu1 }
 0x6ea   :  { %v1897_v13 = vpop.f32.mrf.mxu1 }
 0x6eb   :  { %v3778_v36 = vadd.f32 %v1897_v13, %v1746_v31 }
 0x6ec   :  { %v1899_v39 = vpop.f32.mrf.mxu1 }
 0x6ee   :  { %v1902_v28 = vpop.f32.mrf.mxu1 }
 0x6ef   :  { %v3776_v34 = vadd.f32 %v1902_v28, %v1751_v49 }
 0x6f0   :  { %v1904_v30 = vpop.f32.mrf.mxu1 }
 0x6f1   :  { %v1920_v45 = vadd.f32 %v3776_v34, %v3778_v36 }
 0x6f2   :  { %v1907_v35 = vpop.f32.mrf.mxu1 }
 0x6f3   :  { %v3780_v37 = vadd.f32 %v1907_v35, %v1756_v32 }
 0x6f4   :  { %v1909_v40 = vpop.f32.mrf.mxu1 }
 0x6f5   :  { %v1921_v47 = vadd.f32 %v1920_v45, %v3780_v37 }
 0x6f6   :  { %v1912_v46 = vpop.f32.mrf.mxu1 }
 0x6f7   :  { %v3785_v23 = vadd.f32 %v1912_v46, %v1761_v41 }
 0x6f8   :  { %v1914_v48 = vpop.f32.mrf.mxu1 }
 0x6f9   :  { %v1922_v50 = vadd.f32 %v1921_v47, %v3785_v23 }
 0x6fb   :  { %v1923_v51 = vrot.slane %v1922_v50, 4 }
 0x6fd   :  { %v1924_v57 = vadd.f32 %v1923_v51, %v1922_v50 }
 0x6ff   :  { %v1925_v26 = vrot.slane %v1924_v57, 2 }
 0x701   :  { %v1926_v52 = vadd.f32 %v1925_v26, %v1924_v57 }
 0x703   :  { %v1927_v53 = vrot.slane %v1926_v52, 1 }
 0x705   :  { %v1928_v55 = vadd.f32 %v1927_v53, %v1926_v52 }
 0x707   :  { %2586 = vmatmul.mubr.f32.vlgmr.msra.gmra.mxu0 %v1928_v55 }
 0x708   :  { %2590 = vmatprep.mubr.msk.f32.mxu0 %vm2645_vm10, %v2644_v3  ;;  %2589 = vmatpush3.msra.mxu0 %v2016_v33 }
 0x709   :  { %2628 = vmatprep.subr.mxu0 %v2644_v3 }
 0x7c7   :  { %v2011_v56 = vpop.f32.mrf.mxu0 }
 0x7c8   :  { %v2015_v58 = vmul.f32 0.001953125, %v2011_v56 }
 0x7c9   :  { %v2587_v59 = vpop.f32.mrf.mxu0 }
 0x7ca   :  { %2591 = vmatmul.mubr.msk.f32.vlgmr.msra.gmra.mxu0 %vm1053_vm9, %v2015_v58 }
 0x7cb   :  { %2629 = vmatpush3.msra.mxu0 %v2016_v33  ;;  %2630 = vmatprep.mubr.msk.f32.mxu0 %vm2645_vm10, %v2644_v3 }
 0x7cc   :  { %2633 = vmatprep.subr.mxu0 %v2644_v3 }
 0x88a   :  { %v2086_v60 = vpop.f32.mrf.mxu0 }
 0x88b   :  { %v2093_v61 = vrot.slane %v2086_v60, %v3378_v17 }
 0x88c   :  { %v2592_v29 = vpop.f32.mrf.mxu0 }
 0x88d   :  { %v2094_v62 = vsub.f32 %v3778_v36, %v2093_v61  ;;  %v2095_v63 = vsub.f32 %v3776_v34, %v2093_v61  ;;  %v2096_v0 = vsub.f32 %v3780_v37, %v2093_v61  ;;  %v2097_v1 = vsub.f32 %v3785_v23, %v2093_v61 }
 0x88f   :  { %v2098_v2 = vmul.f32 %v2094_v62, %v2094_v62  ;;  %v2099_v4 = vmul.f32 %v2095_v63, %v2095_v63  ;;  %v2100_v5 = vmul.f32 %v2096_v0, %v2096_v0  ;;  %v2101_v7 = vmul.f32 %v2097_v1, %v2097_v1 }
 0x891   :  { %v2102_v6 = vadd.f32 %v2099_v4, %v2098_v2 }
 0x893   :  { %v2103_v8 = vadd.f32 %v2102_v6, %v2100_v5 }
 0x895   :  { %v2104_v9 = vadd.f32 %v2103_v8, %v2101_v7 }
 0x897   :  { %v2105_v10 = vrot.slane %v2104_v9, 4 }
 0x899   :  { %v2106_v12 = vadd.f32 %v2105_v10, %v2104_v9 }
 0x89b   :  { %v2107_v14 = vrot.slane %v2106_v12, 2 }
 0x89d   :  { %v2108_v42 = vadd.f32 %v2107_v14, %v2106_v12 }
 0x89f   :  { %v2109_v15 = vrot.slane %v2108_v42, 1 }
 0x8a1   :  { %v2110_v16 = vadd.f32 %v2109_v15, %v2108_v42 }
 0x8a3   :  { %2626 = vmatmul.mubr.f32.vlgmr.msra.gmra.mxu1 %v2110_v16 }
 0x963   :  { %v2177_v38 = vpop.f32.mrf.mxu1 }
 0x964   :  { %v2181_v44 = vmul.f32 0.001953125, %v2177_v38 }
 0x965   :  { %v2627_v18 = vpop.f32.mrf.mxu1 }
 0x966   :  { %v2183_v54 = vadd.f32 1e-05, %v2181_v44 }
 0x968   :  { %2642 = vrsqrt.f32 %v2183_v54 }
 0x975   :  { %v2643_v20 = vpop.eup %2642 }
 0x976   :  { %v2185_v21 = vmul.f32 %v2643_v20, %v2182_v19 }
 0x978   :  { %2631 = vmatmul.mubr.msk.f32.vlgmr.msra.gmra.mxu0 %vm1053_vm9, %v2185_v21  ;;  %v2187_v22 = vmul.f32 %v2185_v21, %v2015_v58 }
 0x979   :  { %2634 = vmatpush3.msra.mxu0 %v2016_v33  ;;  %2635 = vmatprep.mubr.msk.f32.mxu0 %vm2645_vm10, %v2644_v3 }
 0x97a   :  { %v2188_v24 = vsub.f32 %v2186_v43, %v2187_v22 }
 0x97c   :  { %2636 = vmatmul.mubr.msk.f32.vlgmr.msra.gmra.mxu0 %vm1053_vm9, %v2188_v24 }
 0xa38   :  { %v2258_v25 = vpop.f32.mrf.mxu0 }
 0xa39   :  { %v2338_v27 = vrot.slane %v2258_v25, %v3378_v17 }
 0xa3a   :  { %v2632_v11 = vpop.f32.mrf.mxu0 }
 0xa3b   :  { %v2339_v13 = vmul.f32 %v2338_v27, %v3778_v36  ;;  %v2340_v28 = vmul.f32 %v2338_v27, %v3776_v34  ;;  %v2341_v49 = vmul.f32 %v2338_v27, %v3780_v37  ;;  %v2342_v30 = vmul.f32 %v2338_v27, %v3785_v23 }
 0xa3c   :  { %v2331_v39 = vpop.f32.mrf.mxu0 }
 0xa3d   :  { %v2346_v31 = vrot.slane %v2331_v39, %v3378_v17 }
 0xa3e   :  { %v2637_v32 = vpop.f32.mrf.mxu0 }
 0xa3f   :  { %v2347_v3 = vadd.f32 %v2346_v31, %v2339_v13  ;;  %v2348_v35 = vadd.f32 %v2346_v31, %v2340_v28  ;;  %v2349_v40 = vadd.f32 %v2346_v31, %v2341_v49  ;;  %v2350_v41 = vadd.f32 %v2346_v31, %v2342_v30 }
 0xa41   :  { %v2351_v45 = vmax.f32 %v2347_v3, 0.0  ;;  %v2352_v46 = vmax.f32 %v2348_v35, 0.0  ;;  %v2353_v47 = vmax.f32 %v2349_v40, 0.0  ;;  %v2354_v48 = vmax.f32 %v2350_v41, 0.0 }
 0xa43   :  { %2355 = vst [vmem:[%s3846_s15] sm:$0xff] %v2351_v45  ;;  %2356 = vst [vmem:[%s3846_s15 + $0x8] sm:$0xff] %v2352_v46 }
 0xa44   :  { %2357 = vst [vmem:[%s3846_s15 + $0x10] sm:$0xff] %v2353_v47  ;;  %2358 = vst [vmem:[%s3846_s15 + $0x18] sm:$0xff] %v2354_v48 }

</bundles_post_ra>
